<compile_context>
chip_gen: v7x
topology: tpu7x:2x2x1
jax: 0.10.0
libtpu: 0.0.40
codegen_flags: <defaults>
</compile_context>

<pallas_src>
import jax
import jax.numpy as jnp
from jax import lax
from jax.experimental import pallas as pl
from jax.experimental.pallas import tpu as pltpu


def basic_block_kernel(x_ref, w1k_ref, w2k_ref, bias_ref, out_ref,
                       xpad, p1pad, acc_ref):
    # Block shapes (Nb batch images per grid step):
    #   x_ref    : (Nb, H, W*Cin)      bf16  lane-packed input (also the skip)
    #   w1k_ref  : (3, W*Cin, W*Cout)  bf16  banded conv1 weights, bn1 scale folded
    #   w2k_ref  : (3, W*Cout, W*Cout) bf16  banded conv2 weights, bn2 scale folded
    #   bias_ref : (2, W*Cout)         f32   [bn1 bias ; bn2 bias], W-tiled
    #   out_ref  : (Nb, H, W*Cout)     bf16
    #   xpad     : (M+2, W*Cin)        f32   packed padded input, all Nb images
    #   p1pad    : (M+2, W*Cout)       f32   packed padded conv2 input
    #   acc_ref  : (M,   W*Cout)       f32   shared matmul accumulator
    Nb, H, WCo = out_ref.shape
    WCi = x_ref.shape[2]
    Hp = H + 2
    M = acc_ref.shape[0]

    zci = jnp.zeros((1, WCi), jnp.float32)
    zco = jnp.zeros((1, WCo), jnp.float32)

    # Pack all Nb images (with their zero H-halo rows) into one tall scratch.
    # Image n occupies scratch rows [1+n*Hp, 1+n*Hp+Hp); its data rows are
    # [2+n*Hp, 2+n*Hp+H).  Row 0 and rows >= 1+Nb*Hp are guard rows: they only
    # ever feed junk accumulator rows, so they may hold garbage safely.
    for n in range(Nb):
        base = 1 + n * Hp
        xpad[base:base + 1, :] = zci                       # top halo
        xpad[base + H + 1:base + H + 2, :] = zci           # bottom halo
        xpad[base + 1:base + 1 + H, :] = x_ref[n].astype(jnp.float32)
        p1pad[base:base + 1, :] = zco
        p1pad[base + H + 1:base + H + 2, :] = zco

    # ---- conv1 (bn1 scale folded into the weights) -------------------------
    # acc[r] = sum_kh xpad[r+kh] @ W1k[kh];  out1[n, h] = acc[1 + n*Hp + h].
    acc_ref[...] = jnp.dot(xpad[0:M, :].astype(jnp.bfloat16), w1k_ref[0],
                           preferred_element_type=jnp.float32)
    acc_ref[...] += jnp.dot(xpad[1:1 + M, :].astype(jnp.bfloat16), w1k_ref[1],
                            preferred_element_type=jnp.float32)
    acc_ref[...] += jnp.dot(xpad[2:2 + M, :].astype(jnp.bfloat16), w1k_ref[2],
                            preferred_element_type=jnp.float32)

    # bn1 bias + relu on the full accumulator (junk rows are harmless), then
    # scatter the real rows into the conv2 padded scratch.
    o1 = jnp.maximum(acc_ref[...] + bias_ref[0:1, :], 0.0)
    for n in range(Nb):
        base = 1 + n * Hp
        p1pad[base + 1:base + 1 + H, :] = o1[base:base + H, :]

    # ---- conv2 (bn2 scale folded into the weights) -------------------------
    acc_ref[...] = jnp.dot(p1pad[0:M, :].astype(jnp.bfloat16), w2k_ref[0],
                           preferred_element_type=jnp.float32)
    acc_ref[...] += jnp.dot(p1pad[1:1 + M, :].astype(jnp.bfloat16), w2k_ref[1],
                            preferred_element_type=jnp.float32)
    acc_ref[...] += jnp.dot(p1pad[2:2 + M, :].astype(jnp.bfloat16), w2k_ref[2],
                            preferred_element_type=jnp.float32)

    # ---- bn2 bias + residual (skip == input block) + relu, bf16 output -----
    a2 = acc_ref[...] + bias_ref[1:2, :]
    for n in range(Nb):
        base = 1 + n * Hp
        y = a2[base:base + H, :] + x_ref[n].astype(jnp.float32)
        out_ref[n] = jnp.maximum(y, 0.0).astype(jnp.bfloat16)


def _pack_conv_weight(w_hwio, W):
    """Fold kw taps / channel mixing / W zero-padding of a 3x3 'SAME' conv
    into 3 banded matrices: out[h] = sum_kh xpad[h+kh] @ Wk[kh], with rows
    packed as (w_in*Cin + ci) and columns as (w_out*Cout + co)."""
    _, _, Cin, Cout = w_hwio.shape
    w_in = jnp.arange(W)[:, None]             # (W, 1)
    w_out = jnp.arange(W)[None, :]            # (1, W)
    kw = w_in - w_out + 1                     # (W, W)
    valid = (kw >= 0) & (kw < 3)
    blocks = w_hwio[:, jnp.clip(kw, 0, 2)]    # (3, W, W, Cin, Cout)
    blocks = jnp.where(valid[None, :, :, None, None], blocks, 0)
    return blocks.transpose(0, 1, 3, 2, 4).reshape(3, W * Cin, W * Cout)


def _pick_batch_tile(N, H):
    """Largest divisor Nb of N with Nb*(H+2) <= 128, preferring >= 2 grid
    steps (so both v7x TensorCores get work and the pipeline can overlap)."""
    divisors = [d for d in range(1, N + 1)
                if N % d == 0 and d * (H + 2) <= 128]
    if not divisors:
        return 1
    preferred = [d for d in divisors if N // d >= 2]
    return max(preferred) if preferred else max(divisors)


def basic_block(x_nhwc, w1, w2, s1, b1, s2, b2):
    """x_nhwc: (N,H,W,Cin) f32; w1,w2: (3,3,C,C) HWIO; s*/b*: (C,) folded BN.
    Returns (N, H, W, Cout) bf16."""
    N, H, W, Cin = x_nhwc.shape
    Cout = w1.shape[-1]
    assert Cin == Cout, "identity skip requires in_channels == out_channels"
    WCi, WCo = W * Cin, W * Cout

    Nb = _pick_batch_tile(N, H)
    steps = N // Nb
    Hp = H + 2
    M = ((Nb * Hp + 7) // 8) * 8          # accumulator rows (sublane aligned)
    ROWS = M + 2                          # + guard rows for the +1/+2 taps

    # bf16 activations / conv weights at the boundary; f32 accumulation inside.
    xp = x_nhwc.astype(jnp.bfloat16).reshape(N, H, WCi)   # free reshape

    # Fold BN scales into the conv weights (per output channel), then band-pack.
    w1s = (w1.astype(jnp.float32) * s1.reshape(1, 1, 1, -1)).astype(jnp.bfloat16)
    w2s = (w2.astype(jnp.float32) * s2.reshape(1, 1, 1, -1)).astype(jnp.bfloat16)
    w1k = _pack_conv_weight(w1s, W)
    w2k = _pack_conv_weight(w2s, W)
    # Follow-ups for larger shapes (moot at this size): fold the 3 kh taps into
    # K = 3*W*Cin for the 256-deep v6e/v7x MXU, single-buffer the constant
    # weight blocks (pl.Buffered(1)), and switch the scratches to bf16.

    def tile_wc(v):  # per-channel vector -> per packed lane (w*C + c)
        return jnp.tile(v.astype(jnp.float32).reshape(-1), W).reshape(1, WCo)

    bias = jnp.concatenate([tile_wc(b1), tile_wc(b2)], axis=0)   # (2, WCo)

    grid_spec = pltpu.PrefetchScalarGridSpec(
        num_scalar_prefetch=0,
        grid=(steps,),
        in_specs=[
            pl.BlockSpec((Nb, H, WCi), lambda b: (b, 0, 0)),
            pl.BlockSpec((3, WCi, WCo), lambda b: (0, 0, 0)),
            pl.BlockSpec((3, WCo, WCo), lambda b: (0, 0, 0)),
            pl.BlockSpec((2, WCo), lambda b: (0, 0)),
        ],
        out_specs=pl.BlockSpec((Nb, H, WCo), lambda b: (b, 0, 0)),
        scratch_shapes=[pltpu.VMEM((ROWS, WCi), jnp.float32),
                        pltpu.VMEM((ROWS, WCo), jnp.float32),
                        pltpu.VMEM((M, WCo), jnp.float32)],
    )

    # Actual MXU work of the banded matmuls (3 taps per conv, K = W*C).
    flops = steps * 3 * 2 * M * (WCi * WCo + WCo * WCo)
    bytes_accessed = (xp.size * 2 + w1k.size * 2 + w2k.size * 2
                      + bias.size * 4 + N * H * WCo * 2)

    out = pl.pallas_call(
        basic_block_kernel,
        out_shape=jax.ShapeDtypeStruct((N, H, WCo), jnp.bfloat16),
        grid_spec=grid_spec,
        compiler_params=pltpu.CompilerParams(
            dimension_semantics=("parallel",)),
        cost_estimate=pl.CostEstimate(flops=flops, transcendentals=0,
                                      bytes_accessed=bytes_accessed),
    )(xp, w1k, w2k, bias)
    return out.reshape(N, H, W, Cout)


def basic_block_reference(x_nhwc, w1, w2, s1, b1, s2, b2):
    """Plain-JAX reference mirroring the kernel's mixed precision: bf16
    activations / BN-scale-folded bf16 weights, f32 accumulation / bias /
    residual / ReLU, bf16 conv2 input and bf16 output."""
    f32 = jnp.float32
    xb = x_nhwc.astype(jnp.bfloat16).astype(f32)
    w1e = (w1.astype(f32) * s1.reshape(1, 1, 1, -1)).astype(jnp.bfloat16).astype(f32)
    w2e = (w2.astype(f32) * s2.reshape(1, 1, 1, -1)).astype(jnp.bfloat16).astype(f32)
    dn = ('NHWC', 'HWIO', 'NHWC')
    c1 = lax.conv_general_dilated(xb, w1e, (1, 1), 'SAME',
                                  dimension_numbers=dn,
                                  precision=lax.Precision.HIGHEST)
    o1 = jnp.maximum(c1 + b1.reshape(1, 1, 1, -1), 0.0)
    o1 = o1.astype(jnp.bfloat16).astype(f32)   # kernel feeds conv2 with bf16 taps
    c2 = lax.conv_general_dilated(o1, w2e, (1, 1), 'SAME',
                                  dimension_numbers=dn,
                                  precision=lax.Precision.HIGHEST)
    o2 = jnp.maximum(c2 + b2.reshape(1, 1, 1, -1) + xb, 0.0)
    return o2.astype(jnp.bfloat16).astype(f32)  # kernel emits bf16


if __name__ == "__main__":
    key = jax.random.PRNGKey(0)
    # W*C = 128 lanes; Nb = 7 -> M = 128 rows per matmul; grid = 4 steps.
    N, C, H, W = 28, 8, 16, 16

    k1, k2, k3 = jax.random.split(key, 3)
    # Input built NCHW like PyTorch, then transposed to the kernel layout.
    x_nchw = jax.random.normal(k1, (N, C, H, W), jnp.float32)
    x_nhwc = jnp.transpose(x_nchw, (0, 2, 3, 1))

    # Conv weights: PyTorch OIHW -> HWIO
    w1_oihw = 0.1 * jax.random.normal(k2, (C, C, 3, 3), jnp.float32)
    w2_oihw = 0.1 * jax.random.normal(k3, (C, C, 3, 3), jnp.float32)
    w1 = jnp.transpose(w1_oihw, (2, 3, 1, 0))
    w2 = jnp.transpose(w2_oihw, (2, 3, 1, 0))

    # Deterministic BatchNorm parameters (eval-mode running stats), folded.
    i = jnp.arange(C, dtype=jnp.float32)
    eps = 1e-5
    gamma1, beta1, mean1, var1 = 1.0 + 0.05 * i, 0.01 * i, 0.02 * i, 1.0 + 0.03 * i
    gamma2, beta2, mean2, var2 = 1.0 - 0.02 * i, -0.01 * i, -0.01 * i, 1.0 + 0.05 * i
    s1 = gamma1 / jnp.sqrt(var1 + eps)
    b1 = beta1 - mean1 * s1
    s2 = gamma2 / jnp.sqrt(var2 + eps)
    b2 = beta2 - mean2 * s2

    out = basic_block(x_nhwc, w1, w2, s1, b1, s2, b2)
    jax.block_until_ready(out)

    ref = basic_block_reference(x_nhwc, w1, w2, s1, b1, s2, b2)
    assert out.shape == (N, H, W, C)
    out_f32 = out.astype(jnp.float32)
    max_err = jnp.max(jnp.abs(out_f32 - ref))
    assert jnp.allclose(out_f32, ref, atol=3e-2, rtol=3e-2), \
        f"mismatch vs reference (max abs err {max_err})"

    print("KERNEL_OK")
</pallas_src>

<mosaic_0001>
module attributes {stable_mosaic.version = 11 : i64} {
  func.func @basic_block_kernel(%arg0: i32, %arg1: memref<7x16x128xbf16, #tpu.memory_space<vmem>>, %arg2: memref<3x128x128xbf16, #tpu.memory_space<vmem>>, %arg3: memref<3x128x128xbf16, #tpu.memory_space<vmem>>, %arg4: memref<2x128xf32, #tpu.memory_space<vmem>>, %arg5: memref<7x16x128xbf16, #tpu.memory_space<vmem>>, %arg6: memref<130x128xf32, #tpu.memory_space<vmem>>, %arg7: memref<130x128xf32, #tpu.memory_space<vmem>>, %arg8: memref<128x128xf32, #tpu.memory_space<vmem>>) attributes {dimension_semantics = [#tpu.dimension_semantics<parallel>], iteration_bounds = array<i64: 4>, scalar_prefetch = 0 : i64, scratch_operands = 3 : i64, tpu.core_type = #tpu.core_type<tc>, window_params = [{transform_indices = @transform_0, window_bounds = array<i64: 7, 16, 128>}, {pipeline_mode = #tpu.pipeline_mode<synchronous>, transform_indices = @transform_1, window_bounds = array<i64: 3, 128, 128>}, {pipeline_mode = #tpu.pipeline_mode<synchronous>, transform_indices = @transform_2, window_bounds = array<i64: 3, 128, 128>}, {pipeline_mode = #tpu.pipeline_mode<synchronous>, transform_indices = @transform_3, window_bounds = array<i64: 2, 128>}, {transform_indices = @transform_4, window_bounds = array<i64: 7, 16, 128>}]} {
    %cst = arith.constant 0.000000e+00 : f32
    %0 = vector.broadcast %cst : f32 to vector<1x128xf32>
    %cst_0 = arith.constant 0.000000e+00 : f32
    %1 = vector.broadcast %cst_0 : f32 to vector<1x128xf32>
    %c1 = arith.constant 1 : index
    %c0 = arith.constant 0 : index
    %2 = vector.load %arg6[%c1, %c0] : memref<130x128xf32, #tpu.memory_space<vmem>>, vector<1x128xf32>
    tpu.vector_store %arg6[%c1, %c0], %0 {strides = array<i32>} : memref<130x128xf32, #tpu.memory_space<vmem>>, vector<1x128xf32>,
    %c18 = arith.constant 18 : index
    %c0_1 = arith.constant 0 : index
    %3 = vector.load %arg6[%c18, %c0_1] : memref<130x128xf32, #tpu.memory_space<vmem>>, vector<1x128xf32>
    tpu.vector_store %arg6[%c18, %c0_1], %0 {strides = array<i32>} : memref<130x128xf32, #tpu.memory_space<vmem>>, vector<1x128xf32>,
    %c0_2 = arith.constant 0 : index
    %c0_3 = arith.constant 0 : index
    %c0_4 = arith.constant 0 : index
    %4 = vector.load %arg1[%c0_2, %c0_3, %c0_4] : memref<7x16x128xbf16, #tpu.memory_space<vmem>>, vector<1x16x128xbf16>
    %5 = vector.shape_cast %4 : vector<1x16x128xbf16> to vector<16x128xbf16>
    %6 = arith.extf %5 : vector<16x128xbf16> to vector<16x128xf32>
    %c2 = arith.constant 2 : index
    %c0_5 = arith.constant 0 : index
    %7 = vector.load %arg6[%c2, %c0_5] : memref<130x128xf32, #tpu.memory_space<vmem>>, vector<16x128xf32>
    tpu.vector_store %arg6[%c2, %c0_5], %6 {strides = array<i32>} : memref<130x128xf32, #tpu.memory_space<vmem>>, vector<16x128xf32>,
    %c1_6 = arith.constant 1 : index
    %c0_7 = arith.constant 0 : index
    %8 = vector.load %arg7[%c1_6, %c0_7] : memref<130x128xf32, #tpu.memory_space<vmem>>, vector<1x128xf32>
    tpu.vector_store %arg7[%c1_6, %c0_7], %1 {strides = array<i32>} : memref<130x128xf32, #tpu.memory_space<vmem>>, vector<1x128xf32>,
    %c18_8 = arith.constant 18 : index
    %c0_9 = arith.constant 0 : index
    %9 = vector.load %arg7[%c18_8, %c0_9] : memref<130x128xf32, #tpu.memory_space<vmem>>, vector<1x128xf32>
    tpu.vector_store %arg7[%c18_8, %c0_9], %1 {strides = array<i32>} : memref<130x128xf32, #tpu.memory_space<vmem>>, vector<1x128xf32>,
    %c19 = arith.constant 19 : index
    %c0_10 = arith.constant 0 : index
    %10 = vector.load %arg6[%c19, %c0_10] : memref<130x128xf32, #tpu.memory_space<vmem>>, vector<1x128xf32>
    tpu.vector_store %arg6[%c19, %c0_10], %0 {strides = array<i32>} : memref<130x128xf32, #tpu.memory_space<vmem>>, vector<1x128xf32>,
    %c36 = arith.constant 36 : index
    %c0_11 = arith.constant 0 : index
    %11 = vector.load %arg6[%c36, %c0_11] : memref<130x128xf32, #tpu.memory_space<vmem>>, vector<1x128xf32>
    tpu.vector_store %arg6[%c36, %c0_11], %0 {strides = array<i32>} : memref<130x128xf32, #tpu.memory_space<vmem>>, vector<1x128xf32>,
    %c1_12 = arith.constant 1 : index
    %c0_13 = arith.constant 0 : index
    %c0_14 = arith.constant 0 : index
    %12 = vector.load %arg1[%c1_12, %c0_13, %c0_14] : memref<7x16x128xbf16, #tpu.memory_space<vmem>>, vector<1x16x128xbf16>
    %13 = vector.shape_cast %12 : vector<1x16x128xbf16> to vector<16x128xbf16>
    %14 = arith.extf %13 : vector<16x128xbf16> to vector<16x128xf32>
    %c20 = arith.constant 20 : index
    %c0_15 = arith.constant 0 : index
    %15 = vector.load %arg6[%c20, %c0_15] : memref<130x128xf32, #tpu.memory_space<vmem>>, vector<16x128xf32>
    tpu.vector_store %arg6[%c20, %c0_15], %14 {strides = array<i32>} : memref<130x128xf32, #tpu.memory_space<vmem>>, vector<16x128xf32>,
    %c19_16 = arith.constant 19 : index
    %c0_17 = arith.constant 0 : index
    %16 = vector.load %arg7[%c19_16, %c0_17] : memref<130x128xf32, #tpu.memory_space<vmem>>, vector<1x128xf32>
    tpu.vector_store %arg7[%c19_16, %c0_17], %1 {strides = array<i32>} : memref<130x128xf32, #tpu.memory_space<vmem>>, vector<1x128xf32>,
    %c36_18 = arith.constant 36 : index
    %c0_19 = arith.constant 0 : index
    %17 = vector.load %arg7[%c36_18, %c0_19] : memref<130x128xf32, #tpu.memory_space<vmem>>, vector<1x128xf32>
    tpu.vector_store %arg7[%c36_18, %c0_19], %1 {strides = array<i32>} : memref<130x128xf32, #tpu.memory_space<vmem>>, vector<1x128xf32>,
    %c37 = arith.constant 37 : index
    %c0_20 = arith.constant 0 : index
    %18 = vector.load %arg6[%c37, %c0_20] : memref<130x128xf32, #tpu.memory_space<vmem>>, vector<1x128xf32>
    tpu.vector_store %arg6[%c37, %c0_20], %0 {strides = array<i32>} : memref<130x128xf32, #tpu.memory_space<vmem>>, vector<1x128xf32>,
    %c54 = arith.constant 54 : index
    %c0_21 = arith.constant 0 : index
    %19 = vector.load %arg6[%c54, %c0_21] : memref<130x128xf32, #tpu.memory_space<vmem>>, vector<1x128xf32>
    tpu.vector_store %arg6[%c54, %c0_21], %0 {strides = array<i32>} : memref<130x128xf32, #tpu.memory_space<vmem>>, vector<1x128xf32>,
    %c2_22 = arith.constant 2 : index
    %c0_23 = arith.constant 0 : index
    %c0_24 = arith.constant 0 : index
    %20 = vector.load %arg1[%c2_22, %c0_23, %c0_24] : memref<7x16x128xbf16, #tpu.memory_space<vmem>>, vector<1x16x128xbf16>
    %21 = vector.shape_cast %20 : vector<1x16x128xbf16> to vector<16x128xbf16>
    %22 = arith.extf %21 : vector<16x128xbf16> to vector<16x128xf32>
    %c38 = arith.constant 38 : index
    %c0_25 = arith.constant 0 : index
    %23 = vector.load %arg6[%c38, %c0_25] : memref<130x128xf32, #tpu.memory_space<vmem>>, vector<16x128xf32>
    tpu.vector_store %arg6[%c38, %c0_25], %22 {strides = array<i32>} : memref<130x128xf32, #tpu.memory_space<vmem>>, vector<16x128xf32>,
    %c37_26 = arith.constant 37 : index
    %c0_27 = arith.constant 0 : index
    %24 = vector.load %arg7[%c37_26, %c0_27] : memref<130x128xf32, #tpu.memory_space<vmem>>, vector<1x128xf32>
    tpu.vector_store %arg7[%c37_26, %c0_27], %1 {strides = array<i32>} : memref<130x128xf32, #tpu.memory_space<vmem>>, vector<1x128xf32>,
    %c54_28 = arith.constant 54 : index
    %c0_29 = arith.constant 0 : index
    %25 = vector.load %arg7[%c54_28, %c0_29] : memref<130x128xf32, #tpu.memory_space<vmem>>, vector<1x128xf32>
    tpu.vector_store %arg7[%c54_28, %c0_29], %1 {strides = array<i32>} : memref<130x128xf32, #tpu.memory_space<vmem>>, vector<1x128xf32>,
    %c55 = arith.constant 55 : index
    %c0_30 = arith.constant 0 : index
    %26 = vector.load %arg6[%c55, %c0_30] : memref<130x128xf32, #tpu.memory_space<vmem>>, vector<1x128xf32>
    tpu.vector_store %arg6[%c55, %c0_30], %0 {strides = array<i32>} : memref<130x128xf32, #tpu.memory_space<vmem>>, vector<1x128xf32>,
    %c72 = arith.constant 72 : index
    %c0_31 = arith.constant 0 : index
    %27 = vector.load %arg6[%c72, %c0_31] : memref<130x128xf32, #tpu.memory_space<vmem>>, vector<1x128xf32>
    tpu.vector_store %arg6[%c72, %c0_31], %0 {strides = array<i32>} : memref<130x128xf32, #tpu.memory_space<vmem>>, vector<1x128xf32>,
    %c3 = arith.constant 3 : index
    %c0_32 = arith.constant 0 : index
    %c0_33 = arith.constant 0 : index
    %28 = vector.load %arg1[%c3, %c0_32, %c0_33] : memref<7x16x128xbf16, #tpu.memory_space<vmem>>, vector<1x16x128xbf16>
    %29 = vector.shape_cast %28 : vector<1x16x128xbf16> to vector<16x128xbf16>
    %30 = arith.extf %29 : vector<16x128xbf16> to vector<16x128xf32>
    %c56 = arith.constant 56 : index
    %c0_34 = arith.constant 0 : index
    %31 = vector.load %arg6[%c56, %c0_34] : memref<130x128xf32, #tpu.memory_space<vmem>>, vector<16x128xf32>
    tpu.vector_store %arg6[%c56, %c0_34], %30 {strides = array<i32>} : memref<130x128xf32, #tpu.memory_space<vmem>>, vector<16x128xf32>,
    %c55_35 = arith.constant 55 : index
    %c0_36 = arith.constant 0 : index
    %32 = vector.load %arg7[%c55_35, %c0_36] : memref<130x128xf32, #tpu.memory_space<vmem>>, vector<1x128xf32>
    tpu.vector_store %arg7[%c55_35, %c0_36], %1 {strides = array<i32>} : memref<130x128xf32, #tpu.memory_space<vmem>>, vector<1x128xf32>,
    %c72_37 = arith.constant 72 : index
    %c0_38 = arith.constant 0 : index
    %33 = vector.load %arg7[%c72_37, %c0_38] : memref<130x128xf32, #tpu.memory_space<vmem>>, vector<1x128xf32>
    tpu.vector_store %arg7[%c72_37, %c0_38], %1 {strides = array<i32>} : memref<130x128xf32, #tpu.memory_space<vmem>>, vector<1x128xf32>,
    %c73 = arith.constant 73 : index
    %c0_39 = arith.constant 0 : index
    %34 = vector.load %arg6[%c73, %c0_39] : memref<130x128xf32, #tpu.memory_space<vmem>>, vector<1x128xf32>
    tpu.vector_store %arg6[%c73, %c0_39], %0 {strides = array<i32>} : memref<130x128xf32, #tpu.memory_space<vmem>>, vector<1x128xf32>,
    %c90 = arith.constant 90 : index
    %c0_40 = arith.constant 0 : index
    %35 = vector.load %arg6[%c90, %c0_40] : memref<130x128xf32, #tpu.memory_space<vmem>>, vector<1x128xf32>
    tpu.vector_store %arg6[%c90, %c0_40], %0 {strides = array<i32>} : memref<130x128xf32, #tpu.memory_space<vmem>>, vector<1x128xf32>,
    %c4 = arith.constant 4 : index
    %c0_41 = arith.constant 0 : index
    %c0_42 = arith.constant 0 : index
    %36 = vector.load %arg1[%c4, %c0_41, %c0_42] : memref<7x16x128xbf16, #tpu.memory_space<vmem>>, vector<1x16x128xbf16>
    %37 = vector.shape_cast %36 : vector<1x16x128xbf16> to vector<16x128xbf16>
    %38 = arith.extf %37 : vector<16x128xbf16> to vector<16x128xf32>
    %c74 = arith.constant 74 : index
    %c0_43 = arith.constant 0 : index
    %39 = vector.load %arg6[%c74, %c0_43] : memref<130x128xf32, #tpu.memory_space<vmem>>, vector<16x128xf32>
    tpu.vector_store %arg6[%c74, %c0_43], %38 {strides = array<i32>} : memref<130x128xf32, #tpu.memory_space<vmem>>, vector<16x128xf32>,
    %c73_44 = arith.constant 73 : index
    %c0_45 = arith.constant 0 : index
    %40 = vector.load %arg7[%c73_44, %c0_45] : memref<130x128xf32, #tpu.memory_space<vmem>>, vector<1x128xf32>
    tpu.vector_store %arg7[%c73_44, %c0_45], %1 {strides = array<i32>} : memref<130x128xf32, #tpu.memory_space<vmem>>, vector<1x128xf32>,
    %c90_46 = arith.constant 90 : index
    %c0_47 = arith.constant 0 : index
    %41 = vector.load %arg7[%c90_46, %c0_47] : memref<130x128xf32, #tpu.memory_space<vmem>>, vector<1x128xf32>
    tpu.vector_store %arg7[%c90_46, %c0_47], %1 {strides = array<i32>} : memref<130x128xf32, #tpu.memory_space<vmem>>, vector<1x128xf32>,
    %c91 = arith.constant 91 : index
    %c0_48 = arith.constant 0 : index
    %42 = vector.load %arg6[%c91, %c0_48] : memref<130x128xf32, #tpu.memory_space<vmem>>, vector<1x128xf32>
    tpu.vector_store %arg6[%c91, %c0_48], %0 {strides = array<i32>} : memref<130x128xf32, #tpu.memory_space<vmem>>, vector<1x128xf32>,
    %c108 = arith.constant 108 : index
    %c0_49 = arith.constant 0 : index
    %43 = vector.load %arg6[%c108, %c0_49] : memref<130x128xf32, #tpu.memory_space<vmem>>, vector<1x128xf32>
    tpu.vector_store %arg6[%c108, %c0_49], %0 {strides = array<i32>} : memref<130x128xf32, #tpu.memory_space<vmem>>, vector<1x128xf32>,
    %c5 = arith.constant 5 : index
    %c0_50 = arith.constant 0 : index
    %c0_51 = arith.constant 0 : index
    %44 = vector.load %arg1[%c5, %c0_50, %c0_51] : memref<7x16x128xbf16, #tpu.memory_space<vmem>>, vector<1x16x128xbf16>
    %45 = vector.shape_cast %44 : vector<1x16x128xbf16> to vector<16x128xbf16>
    %46 = arith.extf %45 : vector<16x128xbf16> to vector<16x128xf32>
    %c92 = arith.constant 92 : index
    %c0_52 = arith.constant 0 : index
    %47 = vector.load %arg6[%c92, %c0_52] : memref<130x128xf32, #tpu.memory_space<vmem>>, vector<16x128xf32>
    tpu.vector_store %arg6[%c92, %c0_52], %46 {strides = array<i32>} : memref<130x128xf32, #tpu.memory_space<vmem>>, vector<16x128xf32>,
    %c91_53 = arith.constant 91 : index
    %c0_54 = arith.constant 0 : index
    %48 = vector.load %arg7[%c91_53, %c0_54] : memref<130x128xf32, #tpu.memory_space<vmem>>, vector<1x128xf32>
    tpu.vector_store %arg7[%c91_53, %c0_54], %1 {strides = array<i32>} : memref<130x128xf32, #tpu.memory_space<vmem>>, vector<1x128xf32>,
    %c108_55 = arith.constant 108 : index
    %c0_56 = arith.constant 0 : index
    %49 = vector.load %arg7[%c108_55, %c0_56] : memref<130x128xf32, #tpu.memory_space<vmem>>, vector<1x128xf32>
    tpu.vector_store %arg7[%c108_55, %c0_56], %1 {strides = array<i32>} : memref<130x128xf32, #tpu.memory_space<vmem>>, vector<1x128xf32>,
    %c109 = arith.constant 109 : index
    %c0_57 = arith.constant 0 : index
    %50 = vector.load %arg6[%c109, %c0_57] : memref<130x128xf32, #tpu.memory_space<vmem>>, vector<1x128xf32>
    tpu.vector_store %arg6[%c109, %c0_57], %0 {strides = array<i32>} : memref<130x128xf32, #tpu.memory_space<vmem>>, vector<1x128xf32>,
    %c126 = arith.constant 126 : index
    %c0_58 = arith.constant 0 : index
    %51 = vector.load %arg6[%c126, %c0_58] : memref<130x128xf32, #tpu.memory_space<vmem>>, vector<1x128xf32>
    tpu.vector_store %arg6[%c126, %c0_58], %0 {strides = array<i32>} : memref<130x128xf32, #tpu.memory_space<vmem>>, vector<1x128xf32>,
    %c6 = arith.constant 6 : index
    %c0_59 = arith.constant 0 : index
    %c0_60 = arith.constant 0 : index
    %52 = vector.load %arg1[%c6, %c0_59, %c0_60] : memref<7x16x128xbf16, #tpu.memory_space<vmem>>, vector<1x16x128xbf16>
    %53 = vector.shape_cast %52 : vector<1x16x128xbf16> to vector<16x128xbf16>
    %54 = arith.extf %53 : vector<16x128xbf16> to vector<16x128xf32>
    %c110 = arith.constant 110 : index
    %c0_61 = arith.constant 0 : index
    %55 = vector.load %arg6[%c110, %c0_61] : memref<130x128xf32, #tpu.memory_space<vmem>>, vector<16x128xf32>
    tpu.vector_store %arg6[%c110, %c0_61], %54 {strides = array<i32>} : memref<130x128xf32, #tpu.memory_space<vmem>>, vector<16x128xf32>,
    %c109_62 = arith.constant 109 : index
    %c0_63 = arith.constant 0 : index
    %56 = vector.load %arg7[%c109_62, %c0_63] : memref<130x128xf32, #tpu.memory_space<vmem>>, vector<1x128xf32>
    tpu.vector_store %arg7[%c109_62, %c0_63], %1 {strides = array<i32>} : memref<130x128xf32, #tpu.memory_space<vmem>>, vector<1x128xf32>,
    %c126_64 = arith.constant 126 : index
    %c0_65 = arith.constant 0 : index
    %57 = vector.load %arg7[%c126_64, %c0_65] : memref<130x128xf32, #tpu.memory_space<vmem>>, vector<1x128xf32>
    tpu.vector_store %arg7[%c126_64, %c0_65], %1 {strides = array<i32>} : memref<130x128xf32, #tpu.memory_space<vmem>>, vector<1x128xf32>,
    %c0_66 = arith.constant 0 : index
    %c0_67 = arith.constant 0 : index
    %58 = vector.load %arg6[%c0_66, %c0_67] : memref<130x128xf32, #tpu.memory_space<vmem>>, vector<128x128xf32>
    %59 = arith.truncf %58 : vector<128x128xf32> to vector<128x128xbf16>
    %c0_68 = arith.constant 0 : index
    %c0_69 = arith.constant 0 : index
    %c0_70 = arith.constant 0 : index
    %60 = vector.load %arg2[%c0_68, %c0_69, %c0_70] : memref<3x128x128xbf16, #tpu.memory_space<vmem>>, vector<1x128x128xbf16>
    %61 = vector.shape_cast %60 : vector<1x128x128xbf16> to vector<128x128xbf16>
    %cst_71 = arith.constant dense<0.000000e+00> : vector<128x128xf32>
    %62 = tpu.matmul %59, %61, %cst_71 {dimension_numbers = #tpu.dot_dimension_numbers<[1], [0], [0], [1], [0, 0, 1, 1], [], []>} : vector<128x128xbf16>, vector<128x128xbf16>, vector<128x128xf32> -> vector<128x128xf32>
    %c0_72 = arith.constant 0 : index
    %c0_73 = arith.constant 0 : index
    %63 = vector.load %arg8[%c0_72, %c0_73] : memref<128x128xf32, #tpu.memory_space<vmem>>, vector<128x128xf32>
    tpu.vector_store %arg8[%c0_72, %c0_73], %62 {strides = array<i32>} : memref<128x128xf32, #tpu.memory_space<vmem>>, vector<128x128xf32>,
    %c0_74 = arith.constant 0 : index
    %c0_75 = arith.constant 0 : index
    %64 = vector.load %arg8[%c0_74, %c0_75] : memref<128x128xf32, #tpu.memory_space<vmem>>, vector<128x128xf32>
    %c1_76 = arith.constant 1 : index
    %c0_77 = arith.constant 0 : index
    %65 = vector.load %arg6[%c1_76, %c0_77] : memref<130x128xf32, #tpu.memory_space<vmem>>, vector<128x128xf32>
    %66 = arith.truncf %65 : vector<128x128xf32> to vector<128x128xbf16>
    %c1_78 = arith.constant 1 : index
    %c0_79 = arith.constant 0 : index
    %c0_80 = arith.constant 0 : index
    %67 = vector.load %arg2[%c1_78, %c0_79, %c0_80] : memref<3x128x128xbf16, #tpu.memory_space<vmem>>, vector<1x128x128xbf16>
    %68 = vector.shape_cast %67 : vector<1x128x128xbf16> to vector<128x128xbf16>
    %cst_81 = arith.constant dense<0.000000e+00> : vector<128x128xf32>
    %69 = tpu.matmul %66, %68, %cst_81 {dimension_numbers = #tpu.dot_dimension_numbers<[1], [0], [0], [1], [0, 0, 1, 1], [], []>} : vector<128x128xbf16>, vector<128x128xbf16>, vector<128x128xf32> -> vector<128x128xf32>
    %70 = arith.addf %64, %69 : vector<128x128xf32>
    %c0_82 = arith.constant 0 : index
    %c0_83 = arith.constant 0 : index
    %71 = vector.load %arg8[%c0_82, %c0_83] : memref<128x128xf32, #tpu.memory_space<vmem>>, vector<128x128xf32>
    tpu.vector_store %arg8[%c0_82, %c0_83], %70 {strides = array<i32>} : memref<128x128xf32, #tpu.memory_space<vmem>>, vector<128x128xf32>,
    %c0_84 = arith.constant 0 : index
    %c0_85 = arith.constant 0 : index
    %72 = vector.load %arg8[%c0_84, %c0_85] : memref<128x128xf32, #tpu.memory_space<vmem>>, vector<128x128xf32>
    %c2_86 = arith.constant 2 : index
    %c0_87 = arith.constant 0 : index
    %73 = vector.load %arg6[%c2_86, %c0_87] : memref<130x128xf32, #tpu.memory_space<vmem>>, vector<128x128xf32>
    %74 = arith.truncf %73 : vector<128x128xf32> to vector<128x128xbf16>
    %c2_88 = arith.constant 2 : index
    %c0_89 = arith.constant 0 : index
    %c0_90 = arith.constant 0 : index
    %75 = vector.load %arg2[%c2_88, %c0_89, %c0_90] : memref<3x128x128xbf16, #tpu.memory_space<vmem>>, vector<1x128x128xbf16>
    %76 = vector.shape_cast %75 : vector<1x128x128xbf16> to vector<128x128xbf16>
    %cst_91 = arith.constant dense<0.000000e+00> : vector<128x128xf32>
    %77 = tpu.matmul %74, %76, %cst_91 {dimension_numbers = #tpu.dot_dimension_numbers<[1], [0], [0], [1], [0, 0, 1, 1], [], []>} : vector<128x128xbf16>, vector<128x128xbf16>, vector<128x128xf32> -> vector<128x128xf32>
    %78 = arith.addf %72, %77 : vector<128x128xf32>
    %c0_92 = arith.constant 0 : index
    %c0_93 = arith.constant 0 : index
    %79 = vector.load %arg8[%c0_92, %c0_93] : memref<128x128xf32, #tpu.memory_space<vmem>>, vector<128x128xf32>
    tpu.vector_store %arg8[%c0_92, %c0_93], %78 {strides = array<i32>} : memref<128x128xf32, #tpu.memory_space<vmem>>, vector<128x128xf32>,
    %c0_94 = arith.constant 0 : index
    %c0_95 = arith.constant 0 : index
    %80 = vector.load %arg8[%c0_94, %c0_95] : memref<128x128xf32, #tpu.memory_space<vmem>>, vector<128x128xf32>
    %c0_96 = arith.constant 0 : index
    %c0_97 = arith.constant 0 : index
    %81 = vector.load %arg4[%c0_96, %c0_97] : memref<2x128xf32, #tpu.memory_space<vmem>>, vector<1x128xf32>
    %82 = vector.broadcast %81 : vector<1x128xf32> to vector<128x128xf32>
    %83 = arith.addf %80, %82 : vector<128x128xf32>
    %cst_98 = arith.constant 0.000000e+00 : f32
    %84 = vector.broadcast %cst_98 : f32 to vector<128x128xf32>
    %85 = arith.maximumf %83, %84 : vector<128x128xf32>
    %86 = vector.extract_strided_slice %85 {offsets = [1, 0], sizes = [16, 128], strides = [1, 1]} : vector<128x128xf32> to vector<16x128xf32>
    %c2_99 = arith.constant 2 : index
    %c0_100 = arith.constant 0 : index
    %87 = vector.load %arg7[%c2_99, %c0_100] : memref<130x128xf32, #tpu.memory_space<vmem>>, vector<16x128xf32>
    tpu.vector_store %arg7[%c2_99, %c0_100], %86 {strides = array<i32>} : memref<130x128xf32, #tpu.memory_space<vmem>>, vector<16x128xf32>,
    %88 = vector.extract_strided_slice %85 {offsets = [19, 0], sizes = [16, 128], strides = [1, 1]} : vector<128x128xf32> to vector<16x128xf32>
    %c20_101 = arith.constant 20 : index
    %c0_102 = arith.constant 0 : index
    %89 = vector.load %arg7[%c20_101, %c0_102] : memref<130x128xf32, #tpu.memory_space<vmem>>, vector<16x128xf32>
    tpu.vector_store %arg7[%c20_101, %c0_102], %88 {strides = array<i32>} : memref<130x128xf32, #tpu.memory_space<vmem>>, vector<16x128xf32>,
    %90 = vector.extract_strided_slice %85 {offsets = [37, 0], sizes = [16, 128], strides = [1, 1]} : vector<128x128xf32> to vector<16x128xf32>
    %c38_103 = arith.constant 38 : index
    %c0_104 = arith.constant 0 : index
    %91 = vector.load %arg7[%c38_103, %c0_104] : memref<130x128xf32, #tpu.memory_space<vmem>>, vector<16x128xf32>
    tpu.vector_store %arg7[%c38_103, %c0_104], %90 {strides = array<i32>} : memref<130x128xf32, #tpu.memory_space<vmem>>, vector<16x128xf32>,
    %92 = vector.extract_strided_slice %85 {offsets = [55, 0], sizes = [16, 128], strides = [1, 1]} : vector<128x128xf32> to vector<16x128xf32>
    %c56_105 = arith.constant 56 : index
    %c0_106 = arith.constant 0 : index
    %93 = vector.load %arg7[%c56_105, %c0_106] : memref<130x128xf32, #tpu.memory_space<vmem>>, vector<16x128xf32>
    tpu.vector_store %arg7[%c56_105, %c0_106], %92 {strides = array<i32>} : memref<130x128xf32, #tpu.memory_space<vmem>>, vector<16x128xf32>,
    %94 = vector.extract_strided_slice %85 {offsets = [73, 0], sizes = [16, 128], strides = [1, 1]} : vector<128x128xf32> to vector<16x128xf32>
    %c74_107 = arith.constant 74 : index
    %c0_108 = arith.constant 0 : index
    %95 = vector.load %arg7[%c74_107, %c0_108] : memref<130x128xf32, #tpu.memory_space<vmem>>, vector<16x128xf32>
    tpu.vector_store %arg7[%c74_107, %c0_108], %94 {strides = array<i32>} : memref<130x128xf32, #tpu.memory_space<vmem>>, vector<16x128xf32>,
    %96 = vector.extract_strided_slice %85 {offsets = [91, 0], sizes = [16, 128], strides = [1, 1]} : vector<128x128xf32> to vector<16x128xf32>
    %c92_109 = arith.constant 92 : index
    %c0_110 = arith.constant 0 : index
    %97 = vector.load %arg7[%c92_109, %c0_110] : memref<130x128xf32, #tpu.memory_space<vmem>>, vector<16x128xf32>
    tpu.vector_store %arg7[%c92_109, %c0_110], %96 {strides = array<i32>} : memref<130x128xf32, #tpu.memory_space<vmem>>, vector<16x128xf32>,
    %98 = vector.extract_strided_slice %85 {offsets = [109, 0], sizes = [16, 128], strides = [1, 1]} : vector<128x128xf32> to vector<16x128xf32>
    %c110_111 = arith.constant 110 : index
    %c0_112 = arith.constant 0 : index
    %99 = vector.load %arg7[%c110_111, %c0_112] : memref<130x128xf32, #tpu.memory_space<vmem>>, vector<16x128xf32>
    tpu.vector_store %arg7[%c110_111, %c0_112], %98 {strides = array<i32>} : memref<130x128xf32, #tpu.memory_space<vmem>>, vector<16x128xf32>,
    %c0_113 = arith.constant 0 : index
    %c0_114 = arith.constant 0 : index
    %100 = vector.load %arg7[%c0_113, %c0_114] : memref<130x128xf32, #tpu.memory_space<vmem>>, vector<128x128xf32>
    %101 = arith.truncf %100 : vector<128x128xf32> to vector<128x128xbf16>
    %c0_115 = arith.constant 0 : index
    %c0_116 = arith.constant 0 : index
    %c0_117 = arith.constant 0 : index
    %102 = vector.load %arg3[%c0_115, %c0_116, %c0_117] : memref<3x128x128xbf16, #tpu.memory_space<vmem>>, vector<1x128x128xbf16>
    %103 = vector.shape_cast %102 : vector<1x128x128xbf16> to vector<128x128xbf16>
    %cst_118 = arith.constant dense<0.000000e+00> : vector<128x128xf32>
    %104 = tpu.matmul %101, %103, %cst_118 {dimension_numbers = #tpu.dot_dimension_numbers<[1], [0], [0], [1], [0, 0, 1, 1], [], []>} : vector<128x128xbf16>, vector<128x128xbf16>, vector<128x128xf32> -> vector<128x128xf32>
    %c0_119 = arith.constant 0 : index
    %c0_120 = arith.constant 0 : index
    %105 = vector.load %arg8[%c0_119, %c0_120] : memref<128x128xf32, #tpu.memory_space<vmem>>, vector<128x128xf32>
    tpu.vector_store %arg8[%c0_119, %c0_120], %104 {strides = array<i32>} : memref<128x128xf32, #tpu.memory_space<vmem>>, vector<128x128xf32>,
    %c0_121 = arith.constant 0 : index
    %c0_122 = arith.constant 0 : index
    %106 = vector.load %arg8[%c0_121, %c0_122] : memref<128x128xf32, #tpu.memory_space<vmem>>, vector<128x128xf32>
    %c1_123 = arith.constant 1 : index
    %c0_124 = arith.constant 0 : index
    %107 = vector.load %arg7[%c1_123, %c0_124] : memref<130x128xf32, #tpu.memory_space<vmem>>, vector<128x128xf32>
    %108 = arith.truncf %107 : vector<128x128xf32> to vector<128x128xbf16>
    %c1_125 = arith.constant 1 : index
    %c0_126 = arith.constant 0 : index
    %c0_127 = arith.constant 0 : index
    %109 = vector.load %arg3[%c1_125, %c0_126, %c0_127] : memref<3x128x128xbf16, #tpu.memory_space<vmem>>, vector<1x128x128xbf16>
    %110 = vector.shape_cast %109 : vector<1x128x128xbf16> to vector<128x128xbf16>
    %cst_128 = arith.constant dense<0.000000e+00> : vector<128x128xf32>
    %111 = tpu.matmul %108, %110, %cst_128 {dimension_numbers = #tpu.dot_dimension_numbers<[1], [0], [0], [1], [0, 0, 1, 1], [], []>} : vector<128x128xbf16>, vector<128x128xbf16>, vector<128x128xf32> -> vector<128x128xf32>
    %112 = arith.addf %106, %111 : vector<128x128xf32>
    %c0_129 = arith.constant 0 : index
    %c0_130 = arith.constant 0 : index
    %113 = vector.load %arg8[%c0_129, %c0_130] : memref<128x128xf32, #tpu.memory_space<vmem>>, vector<128x128xf32>
    tpu.vector_store %arg8[%c0_129, %c0_130], %112 {strides = array<i32>} : memref<128x128xf32, #tpu.memory_space<vmem>>, vector<128x128xf32>,
    %c0_131 = arith.constant 0 : index
    %c0_132 = arith.constant 0 : index
    %114 = vector.load %arg8[%c0_131, %c0_132] : memref<128x128xf32, #tpu.memory_space<vmem>>, vector<128x128xf32>
    %c2_133 = arith.constant 2 : index
    %c0_134 = arith.constant 0 : index
    %115 = vector.load %arg7[%c2_133, %c0_134] : memref<130x128xf32, #tpu.memory_space<vmem>>, vector<128x128xf32>
    %116 = arith.truncf %115 : vector<128x128xf32> to vector<128x128xbf16>
    %c2_135 = arith.constant 2 : index
    %c0_136 = arith.constant 0 : index
    %c0_137 = arith.constant 0 : index
    %117 = vector.load %arg3[%c2_135, %c0_136, %c0_137] : memref<3x128x128xbf16, #tpu.memory_space<vmem>>, vector<1x128x128xbf16>
    %118 = vector.shape_cast %117 : vector<1x128x128xbf16> to vector<128x128xbf16>
    %cst_138 = arith.constant dense<0.000000e+00> : vector<128x128xf32>
    %119 = tpu.matmul %116, %118, %cst_138 {dimension_numbers = #tpu.dot_dimension_numbers<[1], [0], [0], [1], [0, 0, 1, 1], [], []>} : vector<128x128xbf16>, vector<128x128xbf16>, vector<128x128xf32> -> vector<128x128xf32>
    %120 = arith.addf %114, %119 : vector<128x128xf32>
    %c0_139 = arith.constant 0 : index
    %c0_140 = arith.constant 0 : index
    %121 = vector.load %arg8[%c0_139, %c0_140] : memref<128x128xf32, #tpu.memory_space<vmem>>, vector<128x128xf32>
    tpu.vector_store %arg8[%c0_139, %c0_140], %120 {strides = array<i32>} : memref<128x128xf32, #tpu.memory_space<vmem>>, vector<128x128xf32>,
    %c0_141 = arith.constant 0 : index
    %c0_142 = arith.constant 0 : index
    %122 = vector.load %arg8[%c0_141, %c0_142] : memref<128x128xf32, #tpu.memory_space<vmem>>, vector<128x128xf32>
    %c1_143 = arith.constant 1 : index
    %c0_144 = arith.constant 0 : index
    %123 = vector.load %arg4[%c1_143, %c0_144] : memref<2x128xf32, #tpu.memory_space<vmem>>, vector<1x128xf32>
    %124 = vector.broadcast %123 : vector<1x128xf32> to vector<128x128xf32>
    %125 = arith.addf %122, %124 : vector<128x128xf32>
    %126 = vector.extract_strided_slice %125 {offsets = [1, 0], sizes = [16, 128], strides = [1, 1]} : vector<128x128xf32> to vector<16x128xf32>
    %c0_145 = arith.constant 0 : index
    %c0_146 = arith.constant 0 : index
    %c0_147 = arith.constant 0 : index
    %127 = vector.load %arg1[%c0_145, %c0_146, %c0_147] : memref<7x16x128xbf16, #tpu.memory_space<vmem>>, vector<1x16x128xbf16>
    %128 = vector.shape_cast %127 : vector<1x16x128xbf16> to vector<16x128xbf16>
    %129 = arith.extf %128 : vector<16x128xbf16> to vector<16x128xf32>
    %130 = arith.addf %126, %129 : vector<16x128xf32>
    %cst_148 = arith.constant 0.000000e+00 : f32
    %131 = vector.broadcast %cst_148 : f32 to vector<16x128xf32>
    %132 = arith.maximumf %130, %131 : vector<16x128xf32>
    %133 = arith.truncf %132 : vector<16x128xf32> to vector<16x128xbf16>
    %c0_149 = arith.constant 0 : index
    %c0_150 = arith.constant 0 : index
    %c0_151 = arith.constant 0 : index
    %134 = vector.load %arg5[%c0_149, %c0_150, %c0_151] : memref<7x16x128xbf16, #tpu.memory_space<vmem>>, vector<1x16x128xbf16>
    %135 = vector.shape_cast %134 : vector<1x16x128xbf16> to vector<16x128xbf16>
    %136 = vector.shape_cast %133 : vector<16x128xbf16> to vector<1x16x128xbf16>
    tpu.vector_store %arg5[%c0_149, %c0_150, %c0_151], %136 {strides = array<i32>} : memref<7x16x128xbf16, #tpu.memory_space<vmem>>, vector<1x16x128xbf16>,
    %137 = vector.extract_strided_slice %125 {offsets = [19, 0], sizes = [16, 128], strides = [1, 1]} : vector<128x128xf32> to vector<16x128xf32>
    %c1_152 = arith.constant 1 : index
    %c0_153 = arith.constant 0 : index
    %c0_154 = arith.constant 0 : index
    %138 = vector.load %arg1[%c1_152, %c0_153, %c0_154] : memref<7x16x128xbf16, #tpu.memory_space<vmem>>, vector<1x16x128xbf16>
    %139 = vector.shape_cast %138 : vector<1x16x128xbf16> to vector<16x128xbf16>
    %140 = arith.extf %139 : vector<16x128xbf16> to vector<16x128xf32>
    %141 = arith.addf %137, %140 : vector<16x128xf32>
    %cst_155 = arith.constant 0.000000e+00 : f32
    %142 = vector.broadcast %cst_155 : f32 to vector<16x128xf32>
    %143 = arith.maximumf %141, %142 : vector<16x128xf32>
    %144 = arith.truncf %143 : vector<16x128xf32> to vector<16x128xbf16>
    %c1_156 = arith.constant 1 : index
    %c0_157 = arith.constant 0 : index
    %c0_158 = arith.constant 0 : index
    %145 = vector.load %arg5[%c1_156, %c0_157, %c0_158] : memref<7x16x128xbf16, #tpu.memory_space<vmem>>, vector<1x16x128xbf16>
    %146 = vector.shape_cast %145 : vector<1x16x128xbf16> to vector<16x128xbf16>
    %147 = vector.shape_cast %144 : vector<16x128xbf16> to vector<1x16x128xbf16>
    tpu.vector_store %arg5[%c1_156, %c0_157, %c0_158], %147 {strides = array<i32>} : memref<7x16x128xbf16, #tpu.memory_space<vmem>>, vector<1x16x128xbf16>,
    %148 = vector.extract_strided_slice %125 {offsets = [37, 0], sizes = [16, 128], strides = [1, 1]} : vector<128x128xf32> to vector<16x128xf32>
    %c2_159 = arith.constant 2 : index
    %c0_160 = arith.constant 0 : index
    %c0_161 = arith.constant 0 : index
    %149 = vector.load %arg1[%c2_159, %c0_160, %c0_161] : memref<7x16x128xbf16, #tpu.memory_space<vmem>>, vector<1x16x128xbf16>
    %150 = vector.shape_cast %149 : vector<1x16x128xbf16> to vector<16x128xbf16>
    %151 = arith.extf %150 : vector<16x128xbf16> to vector<16x128xf32>
    %152 = arith.addf %148, %151 : vector<16x128xf32>
    %cst_162 = arith.constant 0.000000e+00 : f32
    %153 = vector.broadcast %cst_162 : f32 to vector<16x128xf32>
    %154 = arith.maximumf %152, %153 : vector<16x128xf32>
    %155 = arith.truncf %154 : vector<16x128xf32> to vector<16x128xbf16>
    %c2_163 = arith.constant 2 : index
    %c0_164 = arith.constant 0 : index
    %c0_165 = arith.constant 0 : index
    %156 = vector.load %arg5[%c2_163, %c0_164, %c0_165] : memref<7x16x128xbf16, #tpu.memory_space<vmem>>, vector<1x16x128xbf16>
    %157 = vector.shape_cast %156 : vector<1x16x128xbf16> to vector<16x128xbf16>
    %158 = vector.shape_cast %155 : vector<16x128xbf16> to vector<1x16x128xbf16>
    tpu.vector_store %arg5[%c2_163, %c0_164, %c0_165], %158 {strides = array<i32>} : memref<7x16x128xbf16, #tpu.memory_space<vmem>>, vector<1x16x128xbf16>,
    %159 = vector.extract_strided_slice %125 {offsets = [55, 0], sizes = [16, 128], strides = [1, 1]} : vector<128x128xf32> to vector<16x128xf32>
    %c3_166 = arith.constant 3 : index
    %c0_167 = arith.constant 0 : index
    %c0_168 = arith.constant 0 : index
    %160 = vector.load %arg1[%c3_166, %c0_167, %c0_168] : memref<7x16x128xbf16, #tpu.memory_space<vmem>>, vector<1x16x128xbf16>
    %161 = vector.shape_cast %160 : vector<1x16x128xbf16> to vector<16x128xbf16>
    %162 = arith.extf %161 : vector<16x128xbf16> to vector<16x128xf32>
    %163 = arith.addf %159, %162 : vector<16x128xf32>
    %cst_169 = arith.constant 0.000000e+00 : f32
    %164 = vector.broadcast %cst_169 : f32 to vector<16x128xf32>
    %165 = arith.maximumf %163, %164 : vector<16x128xf32>
    %166 = arith.truncf %165 : vector<16x128xf32> to vector<16x128xbf16>
    %c3_170 = arith.constant 3 : index
    %c0_171 = arith.constant 0 : index
    %c0_172 = arith.constant 0 : index
    %167 = vector.load %arg5[%c3_170, %c0_171, %c0_172] : memref<7x16x128xbf16, #tpu.memory_space<vmem>>, vector<1x16x128xbf16>
    %168 = vector.shape_cast %167 : vector<1x16x128xbf16> to vector<16x128xbf16>
    %169 = vector.shape_cast %166 : vector<16x128xbf16> to vector<1x16x128xbf16>
    tpu.vector_store %arg5[%c3_170, %c0_171, %c0_172], %169 {strides = array<i32>} : memref<7x16x128xbf16, #tpu.memory_space<vmem>>, vector<1x16x128xbf16>,
    %170 = vector.extract_strided_slice %125 {offsets = [73, 0], sizes = [16, 128], strides = [1, 1]} : vector<128x128xf32> to vector<16x128xf32>
    %c4_173 = arith.constant 4 : index
    %c0_174 = arith.constant 0 : index
    %c0_175 = arith.constant 0 : index
    %171 = vector.load %arg1[%c4_173, %c0_174, %c0_175] : memref<7x16x128xbf16, #tpu.memory_space<vmem>>, vector<1x16x128xbf16>
    %172 = vector.shape_cast %171 : vector<1x16x128xbf16> to vector<16x128xbf16>
    %173 = arith.extf %172 : vector<16x128xbf16> to vector<16x128xf32>
    %174 = arith.addf %170, %173 : vector<16x128xf32>
    %cst_176 = arith.constant 0.000000e+00 : f32
    %175 = vector.broadcast %cst_176 : f32 to vector<16x128xf32>
    %176 = arith.maximumf %174, %175 : vector<16x128xf32>
    %177 = arith.truncf %176 : vector<16x128xf32> to vector<16x128xbf16>
    %c4_177 = arith.constant 4 : index
    %c0_178 = arith.constant 0 : index
    %c0_179 = arith.constant 0 : index
    %178 = vector.load %arg5[%c4_177, %c0_178, %c0_179] : memref<7x16x128xbf16, #tpu.memory_space<vmem>>, vector<1x16x128xbf16>
    %179 = vector.shape_cast %178 : vector<1x16x128xbf16> to vector<16x128xbf16>
    %180 = vector.shape_cast %177 : vector<16x128xbf16> to vector<1x16x128xbf16>
    tpu.vector_store %arg5[%c4_177, %c0_178, %c0_179], %180 {strides = array<i32>} : memref<7x16x128xbf16, #tpu.memory_space<vmem>>, vector<1x16x128xbf16>,
    %181 = vector.extract_strided_slice %125 {offsets = [91, 0], sizes = [16, 128], strides = [1, 1]} : vector<128x128xf32> to vector<16x128xf32>
    %c5_180 = arith.constant 5 : index
    %c0_181 = arith.constant 0 : index
    %c0_182 = arith.constant 0 : index
    %182 = vector.load %arg1[%c5_180, %c0_181, %c0_182] : memref<7x16x128xbf16, #tpu.memory_space<vmem>>, vector<1x16x128xbf16>
    %183 = vector.shape_cast %182 : vector<1x16x128xbf16> to vector<16x128xbf16>
    %184 = arith.extf %183 : vector<16x128xbf16> to vector<16x128xf32>
    %185 = arith.addf %181, %184 : vector<16x128xf32>
    %cst_183 = arith.constant 0.000000e+00 : f32
    %186 = vector.broadcast %cst_183 : f32 to vector<16x128xf32>
    %187 = arith.maximumf %185, %186 : vector<16x128xf32>
    %188 = arith.truncf %187 : vector<16x128xf32> to vector<16x128xbf16>
    %c5_184 = arith.constant 5 : index
    %c0_185 = arith.constant 0 : index
    %c0_186 = arith.constant 0 : index
    %189 = vector.load %arg5[%c5_184, %c0_185, %c0_186] : memref<7x16x128xbf16, #tpu.memory_space<vmem>>, vector<1x16x128xbf16>
    %190 = vector.shape_cast %189 : vector<1x16x128xbf16> to vector<16x128xbf16>
    %191 = vector.shape_cast %188 : vector<16x128xbf16> to vector<1x16x128xbf16>
    tpu.vector_store %arg5[%c5_184, %c0_185, %c0_186], %191 {strides = array<i32>} : memref<7x16x128xbf16, #tpu.memory_space<vmem>>, vector<1x16x128xbf16>,
    %192 = vector.extract_strided_slice %125 {offsets = [109, 0], sizes = [16, 128], strides = [1, 1]} : vector<128x128xf32> to vector<16x128xf32>
    %c6_187 = arith.constant 6 : index
    %c0_188 = arith.constant 0 : index
    %c0_189 = arith.constant 0 : index
    %193 = vector.load %arg1[%c6_187, %c0_188, %c0_189] : memref<7x16x128xbf16, #tpu.memory_space<vmem>>, vector<1x16x128xbf16>
    %194 = vector.shape_cast %193 : vector<1x16x128xbf16> to vector<16x128xbf16>
    %195 = arith.extf %194 : vector<16x128xbf16> to vector<16x128xf32>
    %196 = arith.addf %192, %195 : vector<16x128xf32>
    %cst_190 = arith.constant 0.000000e+00 : f32
    %197 = vector.broadcast %cst_190 : f32 to vector<16x128xf32>
    %198 = arith.maximumf %196, %197 : vector<16x128xf32>
    %199 = arith.truncf %198 : vector<16x128xf32> to vector<16x128xbf16>
    %c6_191 = arith.constant 6 : index
    %c0_192 = arith.constant 0 : index
    %c0_193 = arith.constant 0 : index
    %200 = vector.load %arg5[%c6_191, %c0_192, %c0_193] : memref<7x16x128xbf16, #tpu.memory_space<vmem>>, vector<1x16x128xbf16>
    %201 = vector.shape_cast %200 : vector<1x16x128xbf16> to vector<16x128xbf16>
    %202 = vector.shape_cast %199 : vector<16x128xbf16> to vector<1x16x128xbf16>
    tpu.vector_store %arg5[%c6_191, %c0_192, %c0_193], %202 {strides = array<i32>} : memref<7x16x128xbf16, #tpu.memory_space<vmem>>, vector<1x16x128xbf16>,
    return
  }
  func.func @transform_0(%arg0: i32) -> (i32, i32, i32) {
    %c0_i32 = arith.constant 0 : i32
    %c0_i32_0 = arith.constant 0 : i32
    %c0_i32_1 = arith.constant 0 : i32
    return %arg0, %c0_i32, %c0_i32_0 : i32, i32, i32
  }
  func.func @transform_1(%arg0: i32) -> (i32, i32, i32) {
    %c0_i32 = arith.constant 0 : i32
    %c0_i32_0 = arith.constant 0 : i32
    %c0_i32_1 = arith.constant 0 : i32
    %c0_i32_2 = arith.constant 0 : i32
    return %c0_i32, %c0_i32_0, %c0_i32_1 : i32, i32, i32
  }
  func.func @transform_2(%arg0: i32) -> (i32, i32, i32) {
    %c0_i32 = arith.constant 0 : i32
    %c0_i32_0 = arith.constant 0 : i32
    %c0_i32_1 = arith.constant 0 : i32
    %c0_i32_2 = arith.constant 0 : i32
    return %c0_i32, %c0_i32_0, %c0_i32_1 : i32, i32, i32
  }
  func.func @transform_3(%arg0: i32) -> (i32, i32) {
    %c0_i32 = arith.constant 0 : i32
    %c0_i32_0 = arith.constant 0 : i32
    %c0_i32_1 = arith.constant 0 : i32
    return %c0_i32, %c0_i32_0 : i32, i32
  }
  func.func @transform_4(%arg0: i32) -> (i32, i32, i32) {
    %c0_i32 = arith.constant 0 : i32
    %c0_i32_0 = arith.constant 0 : i32
    %c0_i32_1 = arith.constant 0 : i32
    return %arg0, %c0_i32, %c0_i32_0 : i32, i32, i32
  }
}

</mosaic_0001>

<bundles_post_ra>
// kernel: tpu_custom_call.1
= control target key start
LH: loop header
LB: loop body
LE: loop exit
PB: predicated region body
PF: predicated region fallthrough
CT: control target
= control target key end

     0   :  { %9 = vsyncpa [#allocation6], 0  ;;  %s3716_s0 = inlined_call_operand.hbm [shape: bf16[28,16,128], index: 0, kind: input, shape index: {}]   ;;  %s3717_s1 = inlined_call_operand.hbm [shape: bf16[3,128,128], index: 1, kind: input, shape index: {}]   ;;  %s3718_s2 = inlined_call_operand.hbm [shape: bf16[3,128,128], index: 2, kind: input, shape index: {}]   ;;  %s3719_s3 = inlined_call_operand.vmem [shape: f32[2,128], index: 3, kind: input, shape index: {}]   ;;  %s3720_s4 = inlined_call_operand.hbm [shape: bf16[28,16,128], index: 4, kind: output, shape index: {}]  }
   0x1   :  { %11 = vsyncpa [#allocation6 + $0x1], 0 }
   0x2   :  { %12 = vsyncpa [#allocation9], 0 }
   0x3   :  { %13 = vsyncpa [#allocation7], 0 }
   0x4   :  { %15 = vsyncpa [#allocation7 + $0x1], 0  ;;  %s3193_s15 = smov 0   ;;  %s3195_s16 = smov 0  }
   0x5   :  { %s3197_s17 = smov 0   ;;  %s3199_s18 = smov 0  }
   0x6 LB: > { %s3214_s19 = sadd.s32 4294967295, %s3157_s18   ;;  %s2309_s20 = sadd.s32 4294967294, %s3157_s18   ;;  %s3157_s18 = sphi %s3199_s18, %s3747_s18   ;;  %s3153_s17 = sphi %s3197_s17, %s3746_s17   ;;  %s3149_s16 = sphi %s3195_s16, %s3745_s16   ;;  %s3145_s15 = sphi %s3193_s15, %s3744_s15  }
   0x7   : > { %p41_p0 = scmp.ne.s32.totalorder %s3149_s16, %s3145_s15  ;;  %p3721_p1 = scmp.eq.s32.totalorder %s3214_s19, 0 }
   0x8   : > { %p134_p3 = scmp.eq.s32.totalorder %s2309_s20, 3  ;;  %p2310_p5 = scmp.ge.s32.totalorder %s3157_s18, 1 }
   0x9   : > { %p3223_p4 = por %p3721_p1, %p41_p0  ;;  %p141_p7 = scmp.lt.s32.totalorder %s3157_s18, 5 }
   0xa   : > { %p3228_p6 = por %p134_p3, %p41_p0  ;;  %s3159_s24 = smov [#allocation8]  }
   0xb   : > { %s3724_s21 = scalar_select %p3223_p4, 1, 0 }
   0xc   : > { %s3725_s22 = scalar_select %p3228_p6, 1, 0 }
   0xd   : > { %p3233_p8 = pnand %p2310_p5, %p141_p7  ;;  %s153_s25 = sshll.u32 %s3159_s24, 4  ;;  %s154_s25 = int_to_ptr.vmem [resolvable:$true] %s153_s25 }
   0xe   : > { %s3160_s27 = smov [#allocation10]   ;;  %s3001_s5 = scalar_lea.hbm %s3717_s1, 3072 }
   0xf   : > { %s3726_s23 = scalar_select %p3233_p8, 1, 0 }
  0x10   : > { %p2892_p9 = pneg %p3233_p8  ;;  %s166_s28 = sshll.u32 %s3160_s27, 4  ;;  %s3245_s28 = int_to_ptr.vmem [resolvable:$true] %s166_s28 }
  0x11   : > { %p3002_p11 = scmp.ne.s32.totalorder %s3717_s1, %s3001_s5  ;;  %p3008_p3 = scmp.lt.u32.totalorder %s3001_s5, %s3717_s1 }
  0x12   : > { %p3241_p10 = pnand %p2892_p9, %p3721_p1 }
  0x14   : > { %p3003_p12 = pneg %p3241_p10 }
  0x16   : > { %p3004_p13 = pnand %p3003_p12, %p3002_p11 }
  0x18   : > { %p3005_p0 = pneg %p3004_p13 }
  0x1a   : > { %p3010_p5 = pnand %p3008_p3, %p3005_p0 }
  0x1c   : > { %3013 = shalt.err (!%p3010_p5)
}
  0x1d   : > { %s3014_s10 = scalar_lea.vmem %s154_s25, 3072  ;;  %p3022_p2 = scmp.lt.s32.totalorder %s154_s25, %s154_s25 }
  0x1e   : > { %p3015_p7 = scmp.ne.s32.totalorder %s154_s25, %s3014_s10  ;;  %p3023_p6 = scmp.lt.s32.totalorder %s3014_s10, %s3014_s10 }
  0x20   : > { %p3017_p9 = pnand %p3015_p7, %p3003_p12  ;;  %p3024_p4 = por %p3023_p6, %p3022_p2 }
  0x22   : > { %p3018_p1 = pneg %p3017_p9 }
  0x24   : > { %p3025_p8 = pnand %p3024_p4, %p3018_p1 }
  0x26   : > { %3028 = shalt.err (!%p3025_p8)
}
  0x27   : > { %s3161_s11 = smov 64   ;;  %s3162_s12 = smov 4  }
  0x28   : > { %2895 = dma.hbm_to_vmem [thread:$0]  (!%p3241_p10), %s3717_s1, 3072, %s154_s25, [#allocation9], %s3161_s11, %s3161_s11, %s3162_s12  }
  0x29   : > { %s3029_s27 = scalar_lea.hbm %s3718_s2, 3072 }
  0x2a   : > { %p3030_p1 = scmp.ne.s32.totalorder %s3718_s2, %s3029_s27  ;;  %p3036_p6 = scmp.lt.u32.totalorder %s3029_s27, %s3718_s2 }
  0x2c   : > { %p3032_p2 = pnand %p3030_p1, %p3003_p12 }
  0x2e   : > { %p3033_p4 = pneg %p3032_p2 }
  0x30   : > { %p3038_p8 = pnand %p3036_p6, %p3033_p4 }
  0x32   : > { %3041 = shalt.err (!%p3038_p8)
}
  0x33   : > { %s3042_s25 = scalar_lea.vmem %s3245_s28, 3072  ;;  %p3050_p3 = scmp.lt.s32.totalorder %s3245_s28, %s3245_s28 }
  0x34   : > { %p3043_p11 = scmp.ne.s32.totalorder %s3245_s28, %s3042_s25  ;;  %p3051_p5 = scmp.lt.s32.totalorder %s3042_s25, %s3042_s25 }
  0x36   : > { %p3045_p13 = pnand %p3043_p11, %p3003_p12  ;;  %p3052_p7 = por %p3051_p5, %p3050_p3 }
  0x38   : > { %p3046_p0 = pneg %p3045_p13 }
  0x3a   : > { %p3053_p9 = pnand %p3052_p7, %p3046_p0 }
  0x3c   : > { %3056 = shalt.err (!%p3053_p9)
}
  0x3d   : > { %2898 = dma.hbm_to_vmem [thread:$0]  (!%p3241_p10), %s3718_s2, 3072, %s3245_s28, [#allocation9], %s3161_s11, %s3161_s11, %s3162_s12  }
  0x3e   : > { %s3301_s26 = sadd.s32 1, %s3157_s18   ;;  %s28_s9 = sadd.s32 1, %s3153_s17 }
  0x3f   : > { %s25_s10 = ssub.s32 %s3157_s18, %s3301_s26  ;;  %p35_p12 = scmp.ne.s32.totalorder %s3153_s17, %s3149_s16 }
  0x40   : > { %p26_p1 = scmp.eq.s32.totalorder %s25_s10, 0  ;;  %p36_p2 = scmp.eq.s32.totalorder %s3157_s18, 0 }
  0x41   : > { %p3728_p4 = scmp.eq.s32.totalorder %s3214_s19, 3  ;;  %p2909_p8 = scmp.lt.s32.totalorder %s3157_s18, 4 }
  0x42   : > { %s3317_s14 = scalar_select %p26_p1, %s3153_s17, %s28_s9  }
  0x43   : > { %p3311_p6 = por %p3728_p4, %p35_p12  ;;  %p37_p11 = por %p36_p2, %p35_p12 }
  0x44   : > { %s183_s20 = sand.u32 1, %s3153_s17   ;;  %s2512_s28 = smul.u32 896, %s3157_s18 }
  0x45   : > { %s2878_s24 = smul.u32 56, %s183_s20  ;;  %p3321_p10 = pnand %p2909_p8, %p37_p11 }
  0x46   : > { %s3328_s5 = scalar_lea.hbm %s3716_s0, %s2512_s28  ;;  %s3332_s7 = scalar_lea.sflag [#allocation6], %s183_s20 }
  0x47   : > { %s187_s6 = scalar_lea.vmem [#allocation5], %s2878_s24  ;;  %s3057_s8 = scalar_lea.hbm %s3328_s5, 896 }
  0x48   : > { %s195_s25 = sshll.u32 %s187_s6, 4  ;;  %p3058_p13 = scmp.ne.s32.totalorder %s3328_s5, %s3057_s8  ;;  %s3330_s25 = int_to_ptr.vmem [resolvable:$true] %s195_s25 }
  0x49   : > { %p3059_p0 = pneg %p3321_p10  ;;  %s3062_s28 = scalar_lea.hbm %s3716_s0, 3584 }
  0x4a   : > { %p3063_p7 = scmp.lt.u32.totalorder %s3328_s5, %s3716_s0  ;;  %p3064_p9 = scmp.lt.u32.totalorder %s3062_s28, %s3057_s8 }
  0x4b   : > { %p3060_p3 = pnand %p3059_p0, %p3058_p13  ;;  %p3066_p1 = scmp.lt.u32.totalorder %s3057_s8, %s3328_s5 }
  0x4c   : > { %p3065_p12 = por %p3064_p9, %p3063_p7 }
  0x4d   : > { %p3061_p5 = pneg %p3060_p3 }
  0x4e   : > { %p3067_p2 = por %p3066_p1, %p3065_p12 }
  0x50   : > { %p3068_p4 = pnand %p3067_p2, %p3061_p5 }
  0x52   : > { %3071 = shalt.err (!%p3068_p4)
}
  0x53   : > { %s3072_s20 = scalar_lea.vmem %s3330_s25, 896  ;;  %s3163_s24 = smov [#allocation5]  }
  0x54   : > { %p3073_p8 = scmp.ne.s32.totalorder %s3330_s25, %s3072_s20  ;;  %s3077_s6 = sshll.u32 %s3163_s24, 4  ;;  %s3078_s6 = int_to_ptr.vmem [resolvable:$false] %s3077_s6 }
  0x55   : > { %s3079_s9 = scalar_lea.vmem %s3078_s6, 1792  ;;  %p3080_p3 = scmp.lt.s32.totalorder %s3330_s25, %s3078_s6 }
  0x56   : > { %p3075_p11 = pnand %p3073_p8, %p3059_p0  ;;  %p3081_p7 = scmp.lt.s32.totalorder %s3079_s9, %s3072_s20 }
  0x58   : > { %p3076_p13 = pneg %p3075_p11  ;;  %p3082_p9 = por %p3081_p7, %p3080_p3 }
  0x5a   : > { %p3083_p12 = pnand %p3082_p9, %p3076_p13 }
  0x5c   : > { %3086 = shalt.err (!%p3083_p12)
}
  0x5d   : > { %2902 = dma.hbm_to_vmem [thread:$0]  (!%p3321_p10), %s3328_s5, 896, %s3330_s25, %s3332_s7, %s3161_s11, %s3161_s11, %s3162_s12  }
  0x5e   : > { %p3731_p0 = scmp.ne.s32.totalorder %s3726_s23, 0 }
  0x5f   : > { %s3366_s8 = sand.u32 (!%p3731_p0), 1, %s3149_s16   ;;  %p3732_p5 = scmp.ne.s32.totalorder (!%p3731_p0), %s3724_s21, 0 }
  0x60   : > { %207 = sbr.rel (%p3731_p0) target bundleno = 784 (0x310), region = 36  ;;  %s210_s28 = scalar_lea.sflag (!%p3731_p0), [#allocation6], %s3366_s8 }
  0x61   : > { %s2879_s10 = smul.u32 (!%p3731_p0), 56, %s3366_s8 }
  0x63   : > { %s3372_s27 = scalar_lea.vmem (!%p3731_p0), [#allocation5], %s2879_s10 }
  0x67   : > { %3132 = dma.done.wait (%p3732_p5), %s210_s28, 896  }
  0x68   : > { %3134 = vsyncadd (%p3732_p5), %s210_s28, 4294966400  ;;  %p3733_p10 = scmp.eq.s32.totalorder %s3214_s19, 0 }
  0x6a   : > { %3136 = dma.done.wait (%p3733_p10), [#allocation9], 6144   ;;  %p3734_p1 = pmov %p3733_p10 }
  0x6b   : > { %v3164_v0 = vmov 0.0   ;;  %v2952_v1 = vld [vmem:[#allocation8] sm:$0xff]   ;;  %v2953_v2 = vld [vmem:[#allocation8 + $0x8] sm:$0xff]   ;;  %v2954_v3 = vld [vmem:[#allocation8 + $0x10] sm:$0xff]   ;;  %vm1840_vm0 = vcmask 1042432   ;;  %vm1780_vm1 = vcmask 1040384  }
  0x6c   : > { %3138 = vsyncadd (%p3734_p1), [#allocation9], 4294961152  ;;  %249 = vst [vmem:[#allocation2 + $0x1] sm:$0x1] %v3164_v0  ;;  %2622 = vmatprep.subr.bf16.mxu0 %v2952_v1  ;;  %v2955_v4 = vld [vmem:[#allocation8 + $0x18] sm:$0xff]   ;;  %v2457_v5 = vld [vmem:[%s3372_s27] sm:$0xff]  }
  0x6d   : > { %250 = vst [vmem:[#allocation2 + $0x12] sm:$0x1] %v3164_v0  ;;  %257 = vst [vmem:[#allocation3 + $0x1] sm:$0x1] %v3164_v0  ;;  %2623 = vmatpush3.bf16.msra.mxu0 %v2952_v1  ;;  %v3384_v6 = vld [vmem:[%s3372_s27 + $0x8] sm:$0xff]   ;;  %v2458_v7 = vunpack.c.l.bf16 %v2457_v5  ;;  %v2459_v8 = vunpack.c.h.bf16 %v2457_v5  ;;  %v2514_v11 = vld [vmem:[%s3372_s27 + $0x10] sm:$0xff]  }
  0x6e   : > { %258 = vst [vmem:[#allocation3 + $0x12] sm:$0x1] %v3164_v0  ;;  %259 = vst [vmem:[#allocation2 + $0x13] sm:$0x1] %v3164_v0  ;;  %2624 = vmatprep.subr.bf16.mxu0 %v2953_v2  ;;  %v2462_v9 = vunpack.c.l.bf16 %v3384_v6  ;;  %v2463_v10 = vunpack.c.h.bf16 %v3384_v6  ;;  %v2466_v12 = vunpack.c.l.bf16 %v2514_v11  ;;  %v2467_v13 = vunpack.c.h.bf16 %v2514_v11  ;;  %v2515_v14 = vld [vmem:[%s3372_s27 + $0x18] sm:$0xff]   ;;  %v3395_v18 = vld [vmem:[%s3372_s27 + $0x20] sm:$0xff]  }
  0x6f   : > { %260 = vst [vmem:[#allocation2 + $0x24] sm:$0x1] %v3164_v0  ;;  %268 = vst [vmem:[#allocation3 + $0x13] sm:$0x1] %v3164_v0  ;;  %v2956_v15 = vld [vmem:[#allocation8 + $0x20] sm:$0xff]   ;;  %v2470_v16 = vunpack.c.l.bf16 %v2515_v14  ;;  %v2471_v17 = vunpack.c.h.bf16 %v2515_v14  ;;  %v2517_v19 = vld [vmem:[%s3372_s27 + $0x28] sm:$0xff]   ;;  %v2474_v20 = vunpack.c.l.bf16 %v3395_v18  ;;  %v2475_v21 = vunpack.c.h.bf16 %v3395_v18 }
  0x70   : > { %269 = vst [vmem:[#allocation3 + $0x24] sm:$0x1] %v3164_v0  ;;  %270 = vst [vmem:[#allocation2 + $0x25] sm:$0x1] %v3164_v0  ;;  %v2478_v22 = vunpack.c.l.bf16 %v2517_v19  ;;  %v2479_v23 = vunpack.c.h.bf16 %v2517_v19  ;;  %v2957_v24 = vld [vmem:[#allocation8 + $0x28] sm:$0xff]   ;;  %v2518_v25 = vld [vmem:[%s3372_s27 + $0x30] sm:$0xff]  }
  0x71   : > { %271 = vst [vmem:[#allocation2 + $0x36] sm:$0x1] %v3164_v0  ;;  %279 = vst [vmem:[#allocation3 + $0x25] sm:$0x1] %v3164_v0  ;;  %2625 = vmatpush3.bf16.msra.mxu0 %v2953_v2  ;;  %v2482_v26 = vunpack.c.l.bf16 %v2518_v25  ;;  %v2483_v27 = vunpack.c.h.bf16 %v2518_v25  ;;  %v2958_v31 = vld [vmem:[#allocation8 + $0x30] sm:$0xff]   ;;  %v2959_v32 = vld [vmem:[#allocation8 + $0x38] sm:$0xff]  }
  0x72   : > { %280 = vst [vmem:[#allocation3 + $0x36] sm:$0x1] %v3164_v0  ;;  %281 = vst [vmem:[#allocation2 + $0x37] sm:$0x1] %v3164_v0  ;;  %2626 = vmatprep.subr.bf16.mxu0 %v2954_v3  ;;  %v2960_v34 = vld [vmem:[#allocation8 + $0x40] sm:$0xff]   ;;  %v2961_v40 = vld [vmem:[#allocation8 + $0x48] sm:$0xff]  }
  0x73   : > { %282 = vst [vmem:[#allocation2 + $0x48] sm:$0x1] %v3164_v0  ;;  %290 = vst [vmem:[#allocation3 + $0x37] sm:$0x1] %v3164_v0  ;;  %v2962_v42 = vld [vmem:[#allocation8 + $0x50] sm:$0xff]   ;;  %v2963_v46 = vld [vmem:[#allocation8 + $0x58] sm:$0xff]  }
  0x74   : > { %291 = vst [vmem:[#allocation3 + $0x48] sm:$0x1] %v3164_v0  ;;  %292 = vst [vmem:[#allocation2 + $0x49] sm:$0x1] %v3164_v0  ;;  %v2977_v49 = vld [vmem:[#allocation10] sm:$0xff]   ;;  %v2978_v52 = vld [vmem:[#allocation10 + $0x8] sm:$0xff]  }
  0x75   : > { %293 = vst [vmem:[#allocation2 + $0x5a] sm:$0x1] %v3164_v0  ;;  %301 = vst [vmem:[#allocation3 + $0x49] sm:$0x1] %v3164_v0  ;;  %2627 = vmatpush3.bf16.msra.mxu0 %v2954_v3  ;;  %v2964_v50 = vld [vmem:[#allocation8 + $0x60] sm:$0xff]   ;;  %2718 = vmatprep.subr.bf16.mxu1 %v2977_v49  ;;  %v2979_v54 = vld [vmem:[#allocation10 + $0x10] sm:$0xff]  }
  0x76   : > { %302 = vst [vmem:[#allocation3 + $0x5a] sm:$0x1] %v3164_v0  ;;  %303 = vst [vmem:[#allocation2 + $0x5b] sm:$0x1] %v3164_v0  ;;  %2628 = vmatprep.subr.bf16.mxu0 %v2955_v4  ;;  %2719 = vmatpush3.bf16.msra.mxu1 %v2977_v49  ;;  %v2965_v56 = vld [vmem:[#allocation8 + $0x68] sm:$0xff]   ;;  %v2980_v58 = vld [vmem:[#allocation10 + $0x18] sm:$0xff]  }
  0x77   : > { %304 = vst [vmem:[#allocation2 + $0x6c] sm:$0x1] %v3164_v0  ;;  %312 = vst [vmem:[#allocation3 + $0x5b] sm:$0x1] %v3164_v0  ;;  %2720 = vmatprep.subr.bf16.mxu1 %v2978_v52  ;;  %v2966_v61 = vld [vmem:[#allocation8 + $0x70] sm:$0xff]   ;;  %v2967_v1 = vld [vmem:[#allocation8 + $0x78] sm:$0xff]  }
  0x78   : > { %313 = vst [vmem:[#allocation3 + $0x6c] sm:$0x1] %v3164_v0  ;;  %314 = vst [vmem:[#allocation2 + $0x6d] sm:$0x1] %v3164_v0  ;;  %v2968_v5 = vld [vmem:[#allocation8 + $0x80] sm:$0xff]   ;;  %vm1970_vm2 = vcmask 1046528  }
  0x79   : > { %315 = vst [vmem:[#allocation2 + $0x7e] sm:$0x1] %v3164_v0  ;;  %323 = vst [vmem:[#allocation3 + $0x6d] sm:$0x1] %v3164_v0  ;;  %2629 = vmatpush3.bf16.msra.mxu0 %v2955_v4  ;;  %v2985_v18 = vld [vmem:[#allocation10 + $0x40] sm:$0xff]   ;;  %vm1905_vm3 = vcmask 1044480  }
  0x7a   : > { %324 = vst [vmem:[#allocation3 + $0x7e] sm:$0x1] %v3164_v0  ;;  %255 = vst [vmem:[#allocation2 + $0x2] sm:$0xff] %v2458_v7  ;;  %2630 = vmatprep.subr.bf16.mxu0 %v2956_v15  ;;  %2721 = vmatpush3.bf16.msra.mxu1 %v2978_v52  ;;  %vm1863_vm4 = vsmask.f32 2304  ;;  %s3578_s5 = scalar_lea.vmem [#allocation11], %s2879_s10 }
  0x7b   : > { %256 = vst [vmem:[#allocation2 + $0xa] sm:$0xff] %v2459_v8  ;;  %266 = vst [vmem:[#allocation2 + $0x14] sm:$0xff] %v2462_v9  ;;  %2722 = vmatprep.subr.bf16.mxu1 %v2979_v54  ;;  %vm1864_vm5 = vsmask.f32 6416  ;;  %vm1803_vm6 = vsmask.f32 3328 }
  0x7c   : > { %267 = vst [vmem:[#allocation2 + $0x1c] sm:$0xff] %v2463_v10  ;;  %277 = vst [vmem:[#allocation2 + $0x26] sm:$0xff] %v2466_v12  ;;  %vm1804_vm7 = vsmask.f32 7440  ;;  %vm1993_vm10 = vsmask.f32 256 }
  0x7d   : > { %278 = vst [vmem:[#allocation2 + $0x2e] sm:$0xff] %v2467_v13  ;;  %288 = vst [vmem:[#allocation2 + $0x38] sm:$0xff] %v2470_v16  ;;  %2631 = vmatpush3.bf16.msra.mxu0 %v2956_v15  ;;  %v2969_v13 = vld [vmem:[#allocation8 + $0x88] sm:$0xff]   ;;  %vm1994_vm11 = vsmask.f32 4368  ;;  %s2525_s25 = smul.u32 896, %s3214_s19 }
  0x7e   : > { %289 = vst [vmem:[#allocation2 + $0x40] sm:$0xff] %v2471_v17  ;;  %299 = vst [vmem:[#allocation2 + $0x4a] sm:$0xff] %v2474_v20  ;;  %2632 = vmatprep.subr.bf16.mxu0 %v2957_v24  ;;  %2723 = vmatpush3.bf16.msra.mxu1 %v2979_v54  ;;  %vm1928_vm12 = vsmask.f32 1280  ;;  %vm1929_vm13 = vsmask.f32 5392 }
  0x7f   : > { %300 = vst [vmem:[#allocation2 + $0x52] sm:$0xff] %v2475_v21  ;;  %310 = vst [vmem:[#allocation2 + $0x5c] sm:$0xff] %v2478_v22  ;;  %2724 = vmatprep.subr.bf16.mxu1 %v2980_v58  ;;  %s2217_s7 = sshll.u32 %s3578_s5, 4  ;;  %s3667_s20 = scalar_lea.hbm %s3720_s4, %s2525_s25  ;;  %s3669_s7 = int_to_ptr.vmem [resolvable:$true] %s2217_s7 }
  0x80   : > { %311 = vst [vmem:[#allocation2 + $0x64] sm:$0xff] %v2479_v23  ;;  %321 = vst [vmem:[#allocation2 + $0x6e] sm:$0xff] %v2482_v26  ;;  %s2203_s19 = scalar_lea.sflag [#allocation7], %s3366_s8  ;;  %s3087_s24 = scalar_lea.vmem %s3669_s7, 896 }
  0x81   : > { %v325_v28 = vld [vmem:[#allocation2] sm:$0xff]  ;;  %322 = vst [vmem:[#allocation2 + $0x76] sm:$0xff] %v2483_v27  ;;  %2633 = vmatpush3.bf16.msra.mxu0 %v2957_v24  ;;  %v2971_v24 = vld [vmem:[#allocation8 + $0x98] sm:$0xff]   ;;  %vm3553_vm8 = vmor %vm1863_vm4, %vm1864_vm5  ;;  %p3088_p2 = scmp.ne.s32.totalorder %s3669_s7, %s3087_s24  ;;  %s3165_s6 = smov [#allocation11]  }
  0x82   : > { %v326_v29 = vld [vmem:[#allocation2 + $0x8] sm:$0xff]  ;;  %2634 = vmatprep.subr.bf16.mxu0 %v2958_v31  ;;  %v327_v33 = vld [vmem:[#allocation2 + $0x10] sm:$0xff]  ;;  %2725 = vmatpush3.bf16.msra.mxu1 %v2980_v58  ;;  %v2972_v27 = vld [vmem:[#allocation8 + $0xa0] sm:$0xff]   ;;  %s3091_s9 = sshll.u32 %s3165_s6, 4  ;;  %s3092_s9 = int_to_ptr.vmem [resolvable:$false] %s3091_s9 }
  0x83   : > { %v341_v30 = vpack.c.bf16 %v326_v29, %v325_v28  ;;  %v328_v35 = vld [vmem:[#allocation2 + $0x18] sm:$0xff]  ;;  %v329_v36 = vld [vmem:[#allocation2 + $0x20] sm:$0xff]  ;;  %v543_v63 = vld [vmem:[#allocation2 + $0x9] sm:$0xff]  ;;  %p3089_p4 = pnand %p3088_p2, %p3311_p6  ;;  %s3093_s10 = scalar_lea.vmem %s3092_s9, 1792 }
  0x84   : > { %v330_v37 = vld [vmem:[#allocation2 + $0x28] sm:$0xff]  ;;  %v342_v38 = vpack.c.bf16 %v328_v35, %v327_v33  ;;  %v331_v41 = vld [vmem:[#allocation2 + $0x30] sm:$0xff]  ;;  %v545_v4 = vld [vmem:[#allocation2 + $0x19] sm:$0xff]  ;;  %p3094_p11 = scmp.lt.s32.totalorder %s3669_s7, %s3092_s9  ;;  %p3095_p13 = scmp.lt.s32.totalorder %s3093_s10, %s3087_s24 }
  0x85   : > { %2638 = vmatprep.mubr.bf16.mxu0 %v341_v30  ;;  %2635 = vmatpush3.bf16.msra.mxu0 %v2958_v31  ;;  %v343_v39 = vpack.c.bf16 %v330_v37, %v329_v36  ;;  %v334_v43 = vld [vmem:[#allocation2 + $0x48] sm:$0xff]  ;;  %v344_v44 = vpack.c.bf16 %v2470_v16, %v331_v41  ;;  %v544_v3 = vld [vmem:[#allocation2 + $0x11] sm:$0xff]  ;;  %v549_v15 = vld [vmem:[#allocation2 + $0x39] sm:$0xff]  ;;  %p3090_p8 = pneg %p3089_p4 }
  0x86   : > { %2636 = vmatprep.subr.bf16.mxu0 %v2959_v32  ;;  %v345_v45 = vpack.c.bf16 %v334_v43, %v2471_v17  ;;  %v335_v47 = vld [vmem:[#allocation2 + $0x50] sm:$0xff]  ;;  %v336_v48 = vld [vmem:[#allocation2 + $0x58] sm:$0xff]  ;;  %v542_v62 = vld [vmem:[#allocation2 + $0x1] sm:$0xff]  ;;  %v559_v11 = vpack.c.bf16 %v545_v4, %v544_v3  ;;  %p3096_p3 = por %p3095_p13, %p3094_p11 }
  0x87   : > { %v337_v51 = vld [vmem:[#allocation2 + $0x60] sm:$0xff]  ;;  %v338_v53 = vld [vmem:[#allocation2 + $0x68] sm:$0xff]  ;;  %v346_v55 = vpack.c.bf16 %v336_v48, %v335_v47  ;;  %v558_v2 = vpack.c.bf16 %v543_v63, %v542_v62  ;;  %v548_v14 = vld [vmem:[#allocation2 + $0x31] sm:$0xff] }
  0x88   : > { %v347_v57 = vpack.c.bf16 %v338_v53, %v337_v51  ;;  %v339_v59 = vld [vmem:[#allocation2 + $0x70] sm:$0xff]  ;;  %v340_v60 = vld [vmem:[#allocation2 + $0x78] sm:$0xff]  ;;  %v546_v7 = vld [vmem:[#allocation2 + $0x21] sm:$0xff]  ;;  %v561_v22 = vpack.c.bf16 %v549_v15, %v548_v14  ;;  %p3097_p7 = pnand %p3096_p3, %p3090_p8 }
  0x89   : > { %2637 = vmatpush3.bf16.msra.mxu0 %v2959_v32  ;;  %v348_v0 = vpack.c.bf16 %v340_v60, %v339_v59  ;;  %v547_v8 = vld [vmem:[#allocation2 + $0x29] sm:$0xff]  ;;  %v550_v17 = vld [vmem:[#allocation2 + $0x41] sm:$0xff]  ;;  %v552_v25 = vld [vmem:[#allocation2 + $0x51] sm:$0xff] }
  0x8a   : > { %2654 = vmatprep.subr.bf16.mxu0 %v2960_v34  ;;  %v560_v12 = vpack.c.bf16 %v547_v8, %v546_v7  ;;  %v2970_v16 = vld [vmem:[#allocation8 + $0x90] sm:$0xff]   ;;  %v553_v26 = vld [vmem:[#allocation2 + $0x59] sm:$0xff]  ;;  %v554_v28 = vld [vmem:[#allocation2 + $0x61] sm:$0xff] }
  0x8b   : > { %v551_v19 = vld [vmem:[#allocation2 + $0x49] sm:$0xff]  ;;  %v563_v30 = vpack.c.bf16 %v553_v26, %v552_v25  ;;  %v556_v33 = vld [vmem:[#allocation2 + $0x71] sm:$0xff]  ;;  %v2981_v58 = vld [vmem:[#allocation10 + $0x20] sm:$0xff]  }
  0x8c   : > { %2639 = vmatmul.mubr.bf16.vlgmr.msra.gmra.mrb[0].mxu0 %v342_v38  ;;  %v562_v23 = vpack.c.bf16 %v551_v19, %v550_v17  ;;  %v555_v29 = vld [vmem:[#allocation2 + $0x69] sm:$0xff]  ;;  %v2975_v38 = vld [vmem:[#allocation8 + $0xb8] sm:$0xff]   ;;  %2726 = vmatprep.subr.bf16.mxu1 %v2981_v58  ;;  %vm3560_vm9 = vmor %vm1803_vm6, %vm1804_vm7 }
  0x8d   : > { %2655 = vmatpush3.bf16.msra.mxu0 %v2960_v34  ;;  %2642 = vmatprep.mubr.bf16.mxu0 %v343_v39  ;;  %v564_v31 = vpack.c.bf16 %v555_v29, %v554_v28  ;;  %v2973_v32 = vld [vmem:[#allocation8 + $0xa8] sm:$0xff]   ;;  %v557_v34 = vld [vmem:[#allocation2 + $0x79] sm:$0xff]  ;;  %v2974_v35 = vld [vmem:[#allocation8 + $0xb0] sm:$0xff]  }
  0x8e   : > { %2656 = vmatprep.subr.bf16.mxu0 %v2961_v40  ;;  %v565_v36 = vpack.c.bf16 %v557_v34, %v556_v33  ;;  %v2976_v37 = vld [vmem:[%s3372_s27] sm:$0xff]  ;;  %2727 = vmatpush3.bf16.msra.mxu1 %v2981_v58  ;;  %v2984_v60 = vld [vmem:[#allocation10 + $0x38] sm:$0xff]   ;;  %vm3608_vm14 = vmor %vm1993_vm10, %vm1994_vm11 }
  0x8f   : > { %v778_v39 = vld [vmem:[#allocation2 + $0x12] sm:$0xff]  ;;  %v780_v41 = vld [vmem:[#allocation2 + $0x22] sm:$0xff]  ;;  %v789_v52 = vld [vmem:[#allocation2 + $0x6a] sm:$0xff] }
  0x90   : > { %v784_v47 = vld [vmem:[#allocation2 + $0x42] sm:$0xff]  ;;  %vm3617_vm15 = vmor %vm1928_vm12, %vm1929_vm13 }
  0x91   : > { %2657 = vmatpush3.bf16.msra.mxu0 %v2961_v40  ;;  %v779_v40 = vld [vmem:[#allocation2 + $0x1a] sm:$0xff]  ;;  %v796_v49 = vpack.c.bf16 %v2474_v20, %v784_v47  ;;  %v788_v51 = vld [vmem:[#allocation2 + $0x62] sm:$0xff]  ;;  %v2983_v20 = vld [vmem:[#allocation10 + $0x30] sm:$0xff]  }
  0x92   : > { %2658 = vmatprep.subr.bf16.mxu0 %v2962_v42  ;;  %v793_v43 = vpack.c.bf16 %v779_v40, %v778_v39  ;;  %v798_v54 = vpack.c.bf16 %v789_v52, %v788_v51  ;;  %v2982_v59 = vld [vmem:[#allocation10 + $0x28] sm:$0xff]  }
  0x93   : > { %2728 = vmatprep.subr.bf16.mxu1 %v2982_v59 }
  0x94   : > { %2643 = vmatmul.mubr.bf16.gmra.mrb[4].mxu0 %v344_v44  ;;  %2729 = vmatpush3.bf16.msra.mxu1 %v2982_v59 }
  0x95   : > { %2659 = vmatpush3.bf16.msra.mxu0 %v2962_v42  ;;  %2646 = vmatprep.mubr.bf16.mxu0 %v345_v45  ;;  %v781_v42 = vld [vmem:[#allocation2 + $0x2a] sm:$0xff]  ;;  %v782_v45 = vld [vmem:[#allocation2 + $0x32] sm:$0xff] }
  0x96   : > { %2660 = vmatprep.subr.bf16.mxu0 %v2963_v46  ;;  %v794_v44 = vpack.c.bf16 %v781_v42, %v780_v41  ;;  %2730 = vmatprep.subr.bf16.mxu1 %v2983_v20 }
  0x98   : > { %2731 = vmatpush3.bf16.msra.mxu1 %v2983_v20 }
  0x99   : > { %2661 = vmatpush3.bf16.msra.mxu0 %v2963_v46  ;;  %v783_v46 = vld [vmem:[#allocation2 + $0x3a] sm:$0xff]  ;;  %2732 = vmatprep.subr.bf16.mxu1 %v2984_v60 }
  0x9a   : > { %2662 = vmatprep.subr.bf16.mxu0 %v2964_v50  ;;  %v795_v48 = vpack.c.bf16 %v783_v46, %v782_v45  ;;  %v2987_v45 = vld [vmem:[#allocation10 + $0x50] sm:$0xff]  }
  0x9c   : > { %2647 = vmatmul.mubr.bf16.gmra.mrb[8].mxu0 %v346_v55  ;;  %v790_v55 = vld [vmem:[#allocation2 + $0x72] sm:$0xff]  ;;  %2733 = vmatpush3.bf16.msra.mxu1 %v2984_v60 }
  0x9d   : > { %2663 = vmatpush3.bf16.msra.mxu0 %v2964_v50  ;;  %2650 = vmatprep.mubr.bf16.mxu0 %v347_v57  ;;  %v787_v50 = vld [vmem:[#allocation2 + $0x5a] sm:$0xff] }
  0x9e   : > { %2664 = vmatprep.subr.bf16.mxu0 %v2965_v56  ;;  %v797_v53 = vpack.c.bf16 %v787_v50, %v2475_v21  ;;  %2750 = vmatprep.subr.bf16.mxu1 %v2985_v18  ;;  %v3413_v21 = vld [vmem:[%s3719_s3] ss:$0 sm:$0xff] }
  0xa1   : > { %2665 = vmatpush3.bf16.msra.mxu0 %v2965_v56  ;;  %v791_v56 = vld [vmem:[#allocation2 + $0x7a] sm:$0xff] }
  0xa2   : > { %2666 = vmatprep.subr.bf16.mxu0 %v2966_v61  ;;  %v799_v57 = vpack.c.bf16 %v791_v56, %v790_v55  ;;  %v2988_v56 = vld [vmem:[#allocation10 + $0x58] sm:$0xff]  }
  0xa4   : > { %2651 = vmatmul.mubr.bf16.gmra.mrb[12].mxu0 %v348_v0 }
  0xa5   : > { %2667 = vmatpush3.bf16.msra.mxu0 %v2966_v61  ;;  %2670 = vmatprep.mubr.bf16.mxu0 %v558_v2 }
  0xa6   : > { %2668 = vmatprep.subr.bf16.mxu0 %v2967_v1 }
  0xa9   : > { %2669 = vmatpush3.bf16.msra.mxu0 %v2967_v1 }
  0xaa   : > { %2686 = vmatprep.subr.bf16.mxu0 %v2968_v5 }
  0xac   : > { %2671 = vmatmul.mubr.bf16.vlgmr.msra.gmra.mrb[0].mxu0 %v559_v11 }
  0xad   : > { %2687 = vmatpush3.bf16.msra.mxu0 %v2968_v5  ;;  %2674 = vmatprep.mubr.bf16.mxu0 %v560_v12 }
  0xae   : > { %2688 = vmatprep.subr.bf16.mxu0 %v2969_v13 }
  0xb1   : > { %2689 = vmatpush3.bf16.msra.mxu0 %v2969_v13 }
  0xb2   : > { %2690 = vmatprep.subr.bf16.mxu0 %v2970_v16 }
  0xb4   : > { %2675 = vmatmul.mubr.bf16.gmra.mrb[4].mxu0 %v561_v22 }
  0xb5   : > { %2691 = vmatpush3.bf16.msra.mxu0 %v2970_v16  ;;  %2678 = vmatprep.mubr.bf16.mxu0 %v562_v23 }
  0xb6   : > { %2692 = vmatprep.subr.bf16.mxu0 %v2971_v24 }
  0xb9   : > { %2693 = vmatpush3.bf16.msra.mxu0 %v2971_v24 }
  0xba   : > { %2694 = vmatprep.subr.bf16.mxu0 %v2972_v27 }
  0xbc   : > { %2679 = vmatmul.mubr.bf16.gmra.mrb[8].mxu0 %v563_v30 }
  0xbd   : > { %2695 = vmatpush3.bf16.msra.mxu0 %v2972_v27  ;;  %2682 = vmatprep.mubr.bf16.mxu0 %v564_v31 }
  0xbe   : > { %2696 = vmatprep.subr.bf16.mxu0 %v2973_v32 }
  0xc1   : > { %2697 = vmatpush3.bf16.msra.mxu0 %v2973_v32 }
  0xc2   : > { %2698 = vmatprep.subr.bf16.mxu0 %v2974_v35 }
  0xc4   : > { %2683 = vmatmul.mubr.bf16.gmra.mrb[12].mxu0 %v565_v36  ;;  %v2986_v36 = vld [vmem:[#allocation10 + $0x48] sm:$0xff]  }
  0xc5   : > { %2699 = vmatpush3.bf16.msra.mxu0 %v2974_v35  ;;  %2702 = vmatprep.mubr.bf16.mxu0 %v2976_v37 }
  0xc6   : > { %2700 = vmatprep.subr.bf16.mxu0 %v2975_v38 }
  0xc9   : > { %2701 = vmatpush3.bf16.msra.mxu0 %v2975_v38 }
  0xcc   : > { %2703 = vmatmul.mubr.bf16.vlgmr.msra.gmra.mrb[0].mxu0 %v793_v43 }
  0xcd   : > { %2706 = vmatprep.mubr.bf16.mxu0 %v794_v44 }
  0xd4   : > { %2707 = vmatmul.mubr.bf16.gmra.mrb[4].mxu0 %v795_v48 }
  0xd5   : > { %2710 = vmatprep.mubr.bf16.mxu0 %v796_v49 }
  0xdc   : > { %2711 = vmatmul.mubr.bf16.gmra.mrb[8].mxu0 %v797_v53 }
  0xdd   : > { %2714 = vmatprep.mubr.bf16.mxu0 %v798_v54 }
  0xe4   : > { %2715 = vmatmul.mubr.bf16.gmra.mrb[12].mxu0 %v799_v57 }
 0x19f   : > { %v2704_v61 = vpop.f32.mrb[0].mxu0 }
 0x1a0   : > { %v1017_v62 = vadd.f32 %v2704_v61, %v3413_v21  ;;  %v899_v63 = vpop.f32.mrb[1].mxu0 }
 0x1a1   : > { %v1015_v0 = vadd.f32 %v3413_v21, %v899_v63  ;;  %v2705_v1 = vpop.f32.mrb[2].mxu0  ;;  %v2989_v63 = vld [vmem:[#allocation10 + $0x60] sm:$0xff]  }
 0x1a2   : > { %v1033_v2 = vmax.f32 %v1017_v62, 0.0  ;;  %v3418_v3 = vadd.f32 %v2705_v1, %v3413_v21  ;;  %v902_v4 = vpop.f32.mrb[3].mxu0 }
 0x1a3   : > { %v1031_v5 = vmax.f32 %v1015_v0, 0.0  ;;  %v3421_v7 = vadd.f32 %v3413_v21, %v902_v4 }
 0x1a4   : > { %1049 = vst [vmem:[#allocation3 + $0x11] sm:$0xf9] %v1033_v2   ;;  %v1034_v8 = vmax.f32 %v3418_v3, 0.0  ;;  %v2996_v3 = vld [vmem:[#allocation10 + $0x98] sm:$0xff]  }
 0x1a5   : > { %1047 = vst [vmem:[#allocation3 + $0x1] sm:$0xfe] %v1031_v5  ;;  %v1032_v11 = vmax.f32 %v3421_v7, 0.0  ;;  %v2995_v7 = vld [vmem:[#allocation10 + $0x90] sm:$0xff]  }
 0x1a6   : > { %1051 = vst [vmem:[#allocation3 + $0x19] sm:$0xff] %v1034_v8 }
 0x1a7   : > { %1048 = vst [vmem:[#allocation3 + $0x9] sm:$0xff] %v1032_v11  ;;  %v2708_v12 = vpop.f32.mrb[4].mxu0 }
 0x1a8   : > { %v1021_v13 = vadd.f32 %v2708_v12, %v3413_v21  ;;  %v915_v14 = vpop.f32.mrb[5].mxu0 }
 0x1a9   : > { %v1019_v15 = vadd.f32 %v3413_v21, %v915_v14  ;;  %v2709_v16 = vpop.f32.mrb[6].mxu0  ;;  %v2991_v14 = vld [vmem:[#allocation10 + $0x70] sm:$0xff]  }
 0x1aa   : > { %v1037_v17 = vmax.f32 %v1021_v13, 0.0  ;;  %v3432_v19 = vadd.f32 %v2709_v16, %v3413_v21  ;;  %v918_v22 = vpop.f32.mrb[7].mxu0  ;;  %v2990_v13 = vld [vmem:[#allocation10 + $0x68] sm:$0xff]  }
 0x1ab   : > { %v1035_v23 = vmax.f32 %v1019_v15, 0.0  ;;  %v3435_v24 = vadd.f32 %v3413_v21, %v918_v22 }
 0x1ac   : > { %1055 = vst [vmem:[#allocation3 + $0x31] sm:$0x9f] %v1037_v17   ;;  %v1038_v25 = vmax.f32 %v3432_v19, 0.0  ;;  %v1068_v28 = vld [vmem:[#allocation3] sm:$0xff] }
 0x1ad   : > { %1052 = vst [vmem:[#allocation3 + $0x21] sm:$0xe7] %v1035_v23   ;;  %v1036_v26 = vmax.f32 %v3435_v24, 0.0  ;;  %v1071_v27 = vld [vmem:[#allocation3 + $0x18] sm:$0xff]  ;;  %v1285_v16 = vld [vmem:[#allocation3 + $0x1] sm:$0xff] }
 0x1ae   : > { %1057 = vst [vmem:[#allocation3 + $0x39] sm:$0xff] %v1038_v25  ;;  %v1069_v29 = vld [vmem:[#allocation3 + $0x8] sm:$0xff]  ;;  %v1070_v30 = vld [vmem:[#allocation3 + $0x10] sm:$0xff]  ;;  %v2997_v24 = vld [vmem:[#allocation10 + $0xa0] sm:$0xff]  }
 0x1af   : > { %1054 = vst [vmem:[#allocation3 + $0x29] sm:$0xff] %v1036_v26  ;;  %v2712_v31 = vpop.f32.mrb[8].mxu0  ;;  %v1084_v32 = vpack.c.bf16 %v1069_v29, %v1068_v28  ;;  %v1085_v33 = vpack.c.bf16 %v1071_v27, %v1070_v30  ;;  %v2992_v29 = vld [vmem:[#allocation10 + $0x78] sm:$0xff]   ;;  %v1301_v30 = vpack.c.bf16 %v1032_v11, %v1285_v16 }
 0x1b0   : > { %v3444_v34 = vadd.f32 %v2712_v31, %v3413_v21  ;;  %v931_v35 = vpop.f32.mrb[9].mxu0  ;;  %v2993_v31 = vld [vmem:[#allocation10 + $0x80] sm:$0xff]  }
 0x1b1   : > { %v1023_v37 = vadd.f32 %v3413_v21, %v931_v35  ;;  %v2713_v38 = vpop.f32.mrb[10].mxu0  ;;  %2734 = vmatprep.mubr.bf16.mxu1 %v1084_v32  ;;  %v1287_v32 = vld [vmem:[#allocation3 + $0x11] sm:$0xff] }
 0x1b2   : > { %v1041_v39 = vmax.f32 %v3444_v34, 0.0  ;;  %v1026_v40 = vadd.f32 %v2713_v38, %v3413_v21  ;;  %v934_v41 = vpop.f32.mrb[11].mxu0  ;;  %2735 = vmatmul.mubr.bf16.vlgmr.msra.gmra.mrb[0].mxu1 %v1085_v33  ;;  %v1302_v35 = vpack.c.bf16 %v1034_v8, %v1287_v32  ;;  %v3000_v34 = vld [vmem:[#allocation10 + $0xb8] sm:$0xff]   ;;  %v3494_v32 = vld [vmem:[%s3719_s3 + $0x1] ss:$0 sm:$0xff] }
 0x1b3   : > { %v1039_v42 = vmax.f32 %v1023_v37, 0.0  ;;  %v1024_v43 = vadd.f32 %v3413_v21, %v934_v41  ;;  %2751 = vmatpush3.bf16.msra.mxu1 %v2985_v18  ;;  %v1291_v11 = vld [vmem:[#allocation3 + $0x31] sm:$0xff] }
 0x1b4   : > { %1060 = vst [vmem:[#allocation3 + $0x51] sm:$0xff] %v1041_v39  ;;  %v1042_v44 = vmax.f32 %v1026_v40, 0.0  ;;  %2752 = vmatprep.subr.bf16.mxu1 %v2986_v36  ;;  %v1072_v48 = vld [vmem:[#allocation3 + $0x20] sm:$0xff]  ;;  %v1304_v40 = vpack.c.bf16 %v1038_v25, %v1291_v11  ;;  %v2999_v25 = vld [vmem:[#allocation10 + $0xb0] sm:$0xff]  }
 0x1b5   : > { %1058 = vst [vmem:[#allocation3 + $0x41] sm:$0x7f] %v1039_v42  ;;  %v1040_v46 = vmax.f32 %v1024_v43, 0.0  ;;  %v1075_v47 = vld [vmem:[#allocation3 + $0x38] sm:$0xff]  ;;  %v1289_v33 = vld [vmem:[#allocation3 + $0x21] sm:$0xff] }
 0x1b6   : > { %1061 = vst [vmem:[#allocation3 + $0x59] sm:$0xf9] %v1042_v44   ;;  %v1073_v49 = vld [vmem:[#allocation3 + $0x28] sm:$0xff]  ;;  %v1074_v50 = vld [vmem:[#allocation3 + $0x30] sm:$0xff]  ;;  %v1303_v37 = vpack.c.bf16 %v1036_v26, %v1289_v33  ;;  %v2998_v44 = vld [vmem:[#allocation10 + $0xa8] sm:$0xff]  }
 0x1b7   : > { %1059 = vst [vmem:[#allocation3 + $0x49] sm:$0xfe] %v1040_v46  ;;  %v2716_v51 = vpop.f32.mrb[12].mxu0  ;;  %2753 = vmatpush3.bf16.msra.mxu1 %v2986_v36  ;;  %v1086_v52 = vpack.c.bf16 %v1073_v49, %v1072_v48  ;;  %v1087_v53 = vpack.c.bf16 %v1075_v47, %v1074_v50  ;;  %v2994_v36 = vld [vmem:[#allocation10 + $0x88] sm:$0xff]   ;;  %v1520_v47 = vld [vmem:[#allocation3 + $0xa] sm:$0xff] }
 0x1b8   : > { %v3453_v54 = vadd.f32 %v2716_v51, %v3413_v21  ;;  %v947_v55 = vpop.f32.mrb[13].mxu0  ;;  %2754 = vmatprep.subr.bf16.mxu1 %v2987_v45  ;;  %v1519_v46 = vld [vmem:[#allocation3 + $0x2] sm:$0xff]  ;;  %v1522_v49 = vld [vmem:[#allocation3 + $0x1a] sm:$0xff]  ;;  %v1524_v51 = vld [vmem:[#allocation3 + $0x2a] sm:$0xff] }
 0x1b9   : > { %v3456_v57 = vadd.f32 %v3413_v21, %v947_v55  ;;  %v2717_v58 = vpop.f32.mrb[14].mxu0  ;;  %2738 = vmatprep.mubr.bf16.mxu1 %v1086_v52  ;;  %v1523_v50 = vld [vmem:[#allocation3 + $0x22] sm:$0xff]  ;;  %v1521_v52 = vld [vmem:[#allocation3 + $0x12] sm:$0xff] }
 0x1ba   : > { %v1045_v59 = vmax.f32 %v3453_v54, 0.0  ;;  %v1030_v20 = vadd.f32 %v2717_v58, %v3413_v21  ;;  %v950_v60 = vpop.f32.mrb[15].mxu0  ;;  %2739 = vmatmul.mubr.bf16.gmra.mrb[4].mxu1 %v1087_v53  ;;  %v1536_v53 = vpack.c.bf16 %v1522_v49, %v1521_v52  ;;  %v1537_v55 = vpack.c.bf16 %v1524_v51, %v1523_v50  ;;  %v1525_v54 = vld [vmem:[#allocation3 + $0x32] sm:$0xff] }
 0x1bb   : > { %v1043_v18 = vmax.f32 %v3456_v57, 0.0  ;;  %v1028_v61 = vadd.f32 %v3413_v21, %v950_v60  ;;  %2755 = vmatpush3.bf16.msra.mxu1 %v2987_v45 }
 0x1bc   : > { %1066 = vst [vmem:[#allocation3 + $0x71] sm:$0xff] %v1045_v59  ;;  %v1046_v62 = vmax.f32 %v1030_v20, 0.0  ;;  %2756 = vmatprep.subr.bf16.mxu1 %v2988_v56  ;;  %v1076_v2 = vld [vmem:[#allocation3 + $0x40] sm:$0xff] }
 0x1bd   : > { %1063 = vst [vmem:[#allocation3 + $0x61] sm:$0xff] %v1043_v18  ;;  %v1044_v0 = vmax.f32 %v1028_v61, 0.0  ;;  %v1079_v1 = vld [vmem:[#allocation3 + $0x58] sm:$0xff]  ;;  %v1293_v41 = vld [vmem:[#allocation3 + $0x41] sm:$0xff] }
 0x1be   : > { %1067 = vst [vmem:[#allocation3 + $0x79] sm:$0x1f] %v1046_v62  ;;  %v1077_v4 = vld [vmem:[#allocation3 + $0x48] sm:$0xff]  ;;  %v1078_v5 = vld [vmem:[#allocation3 + $0x50] sm:$0xff]  ;;  %v1296_v26 = vld [vmem:[#allocation3 + $0x59] sm:$0xff] }
 0x1bf   : > { %1064 = vst [vmem:[#allocation3 + $0x69] sm:$0xe7] %v1044_v0   ;;  %2757 = vmatpush3.bf16.msra.mxu1 %v2988_v56  ;;  %v1088_v12 = vpack.c.bf16 %v1077_v4, %v1076_v2  ;;  %v1089_v21 = vpack.c.bf16 %v1079_v1, %v1078_v5  ;;  %v1294_v38 = vld [vmem:[#allocation3 + $0x49] sm:$0xff]  ;;  %v1306_v43 = vpack.c.bf16 %v1296_v26, %v1041_v39  ;;  %v1526_v56 = vld [vmem:[#allocation3 + $0x3a] sm:$0xff]  ;;  %v1529_v62 = vld [vmem:[#allocation3 + $0x52] sm:$0xff] }
 0x1c0   : > { %2758 = vmatprep.subr.bf16.mxu1 %v2989_v63  ;;  %v1305_v8 = vpack.c.bf16 %v1294_v38, %v1293_v41  ;;  %v1535_v39 = vpack.c.bf16 %v1520_v47, %v1519_v46  ;;  %v1528_v57 = vld [vmem:[#allocation3 + $0x4a] sm:$0xff]  ;;  %v1538_v58 = vpack.c.bf16 %v1526_v56, %v1525_v54 }
 0x1c1   : > { %2742 = vmatprep.mubr.bf16.mxu1 %v1088_v12  ;;  %v2485_v5 = vld [vmem:[%s3372_s27] sm:$0xff]  }
 0x1c2   : > { %2743 = vmatmul.mubr.bf16.gmra.mrb[8].mxu1 %v1089_v21  ;;  %v2486_v12 = vunpack.c.l.bf16 %v2485_v5  ;;  %v2520_v21 = vld [vmem:[%s3372_s27 + $0x10] sm:$0xff]  }
 0x1c3   : > { %2759 = vmatpush3.bf16.msra.mxu1 %v2989_v63 }
 0x1c4   : > { %2760 = vmatprep.subr.bf16.mxu1 %v2990_v13  ;;  %v1080_v17 = vld [vmem:[#allocation3 + $0x60] sm:$0xff]  ;;  %v1781_v16 = vrot.slane %v2486_v12, 7 }
 0x1c5   : > { %v1083_v15 = vld [vmem:[#allocation3 + $0x78] sm:$0xff] }
 0x1c6   : > { %v1081_v22 = vld [vmem:[#allocation3 + $0x68] sm:$0xff]  ;;  %v1082_v23 = vld [vmem:[#allocation3 + $0x70] sm:$0xff]  ;;  %v1300_v45 = vld [vmem:[#allocation3 + $0x79] sm:$0xff] }
 0x1c7   : > { %2761 = vmatpush3.bf16.msra.mxu1 %v2990_v13  ;;  %v1090_v27 = vpack.c.bf16 %v1081_v22, %v1080_v17  ;;  %v1091_v28 = vpack.c.bf16 %v1083_v15, %v1082_v23  ;;  %v1298_v42 = vld [vmem:[#allocation3 + $0x69] sm:$0xff]  ;;  %v1308_v48 = vpack.c.bf16 %v1300_v45, %v1045_v59  ;;  %v1530_v60 = vld [vmem:[#allocation3 + $0x5a] sm:$0xff]  ;;  %v1533_v1 = vld [vmem:[#allocation3 + $0x72] sm:$0xff]  ;;  %v2487_v13 = vunpack.c.h.bf16 %v2485_v5 }
 0x1c8   : > { %2762 = vmatprep.subr.bf16.mxu1 %v2991_v14  ;;  %v1307_v19 = vpack.c.bf16 %v1298_v42, %v1043_v18  ;;  %v1527_v59 = vld [vmem:[#allocation3 + $0x42] sm:$0xff]  ;;  %v1532_v61 = vld [vmem:[#allocation3 + $0x6a] sm:$0xff]  ;;  %v1540_v63 = vpack.c.bf16 %v1530_v60, %v1529_v62  ;;  %v1534_v2 = vld [vmem:[#allocation3 + $0x7a] sm:$0xff]  ;;  %v1841_v15 = vrot.slane %v2462_v9, 5  ;;  %v3487_v17 = vrot.slane %v2463_v10, 5 }
 0x1c9   : > { %2746 = vmatprep.mubr.bf16.mxu1 %v1090_v27  ;;  %v1539_v20 = vpack.c.bf16 %v1528_v57, %v1527_v59  ;;  %v1531_v18 = vld [vmem:[#allocation3 + $0x62] sm:$0xff]  ;;  %v1542_v4 = vpack.c.bf16 %v1534_v2, %v1533_v1  ;;  %v2495_v22 = vunpack.c.h.bf16 %v2520_v21 }
 0x1ca   : > { %2747 = vmatmul.mubr.bf16.gmra.mrb[12].mxu1 %v1091_v28  ;;  %v1541_v0 = vpack.c.bf16 %v1532_v61, %v1531_v18  ;;  %v2522_v23 = vld [vmem:[%s3372_s27 + $0x20] sm:$0xff]   ;;  %v2494_v28 = vunpack.c.l.bf16 %v2520_v21  ;;  %v1843_v6 = vsel %vm1840_vm0, %v1841_v15, %v3487_v17 }
 0x1cb   : > { %2763 = vmatpush3.bf16.msra.mxu1 %v2991_v14  ;;  %2766 = vmatprep.mubr.bf16.mxu1 %v1301_v30  ;;  %v2521_v14 = vld [vmem:[%s3372_s27 + $0x18] sm:$0xff]   ;;  %v1782_v30 = vrot.slane %v2487_v13, 7  ;;  %v2502_v9 = vunpack.c.l.bf16 %v2522_v23  ;;  %v2503_v33 = vunpack.c.h.bf16 %v2522_v23 }
 0x1cc   : > { %2764 = vmatprep.subr.bf16.mxu1 %v2992_v29  ;;  %v2498_v27 = vunpack.c.l.bf16 %v2521_v14  ;;  %v3504_v38 = vrot.slane %v2494_v28, 3 }
 0x1cd   : > { %v1783_v10 = vsel %vm1780_vm1, %v1781_v16, %v1782_v30 }
 0x1ce   : > { %v3502_v11 = vrot.slane %v2498_v27, 1 }
 0x1cf   : > { %2765 = vmatpush3.bf16.msra.mxu1 %v2992_v29  ;;  %v2524_v29 = vld [vmem:[%s3372_s27 + $0x30] sm:$0xff]  }
 0x1d0   : > { %2782 = vmatprep.subr.bf16.mxu1 %v2993_v31 }
 0x1d2   : > { %2767 = vmatmul.mubr.bf16.vlgmr.msra.gmra.mrb[0].mxu1 %v1302_v35  ;;  %v3499_v35 = vrot.slane %v2495_v22, 3 }
 0x1d3   : > { %2770 = vmatprep.mubr.bf16.mxu1 %v1303_v37  ;;  %2783 = vmatpush3.bf16.msra.mxu1 %v2993_v31  ;;  %v2499_v31 = vunpack.c.h.bf16 %v2521_v14  ;;  %v2510_v37 = vunpack.c.l.bf16 %v2524_v29 }
 0x1d4   : > { %2784 = vmatprep.subr.bf16.mxu1 %v2994_v36  ;;  %v3530_v54 = vsel %vm1905_vm3, %v3504_v38, %v3499_v35 }
 0x1d7   : > { %2785 = vmatpush3.bf16.msra.mxu1 %v2994_v36  ;;  %v2523_v36 = vld [vmem:[%s3372_s27 + $0x28] sm:$0xff]  }
 0x1d8   : > { %2786 = vmatprep.subr.bf16.mxu1 %v2995_v7  ;;  %v2507_v41 = vunpack.c.h.bf16 %v2523_v36 }
 0x1da   : > { %2771 = vmatmul.mubr.bf16.gmra.mrb[4].mxu1 %v1304_v40  ;;  %v2511_v40 = vunpack.c.h.bf16 %v2524_v29  ;;  %v3520_v50 = vrot.slane %v2507_v41, 5 }
 0x1db   : > { %2774 = vmatprep.mubr.bf16.mxu1 %v1305_v8  ;;  %2787 = vmatpush3.bf16.msra.mxu1 %v2995_v7 }
 0x1dc   : > { %2788 = vmatprep.subr.bf16.mxu1 %v2996_v3  ;;  %v3518_v49 = vrot.slane %v2511_v40, 3 }
 0x1df   : > { %2789 = vmatpush3.bf16.msra.mxu1 %v2996_v3 }
 0x1e0   : > { %2790 = vmatprep.subr.bf16.mxu1 %v2997_v24 }
 0x1e2   : > { %2775 = vmatmul.mubr.bf16.gmra.mrb[8].mxu1 %v1306_v43  ;;  %v3510_v43 = vrot.slane %v2502_v9, 7 }
 0x1e3   : > { %2778 = vmatprep.mubr.bf16.mxu1 %v1307_v19  ;;  %2791 = vmatpush3.bf16.msra.mxu1 %v2997_v24  ;;  %v3507_v24 = vrot.slane %v2499_v31, 1  ;;  %v2506_v19 = vunpack.c.l.bf16 %v2523_v36 }
 0x1e4   : > { %2792 = vmatprep.subr.bf16.mxu1 %v2998_v44 }
 0x1e7   : > { %2793 = vmatpush3.bf16.msra.mxu1 %v2998_v44  ;;  %v3512_v44 = vrot.slane %v2503_v33, 7 }
 0x1e8   : > { %2794 = vmatprep.subr.bf16.mxu1 %v2999_v25 }
 0x1e9   : > { %v3537_v18 = vsel %vm1780_vm1, %v3510_v43, %v3512_v44 }
 0x1ea   : > { %2779 = vmatmul.mubr.bf16.gmra.mrb[12].mxu1 %v1308_v48  ;;  %v3515_v48 = vrot.slane %v2510_v37, 3 }
 0x1eb   : > { %2795 = vmatpush3.bf16.msra.mxu1 %v2999_v25  ;;  %2798 = vmatprep.mubr.bf16.mxu1 %v1535_v39 }
 0x1ec   : > { %2796 = vmatprep.subr.bf16.mxu1 %v3000_v34 }
 0x1ef   : > { %2797 = vmatpush3.bf16.msra.mxu1 %v3000_v34 }
 0x1f2   : > { %2799 = vmatmul.mubr.bf16.vlgmr.msra.gmra.mrb[0].mxu1 %v1536_v53 }
 0x1f3   : > { %2802 = vmatprep.mubr.bf16.mxu1 %v1537_v55  ;;  %v3525_v55 = vsel %vm1970_vm2, %v3502_v11, %v3507_v24 }
 0x1fa   : > { %2803 = vmatmul.mubr.bf16.gmra.mrb[4].mxu1 %v1538_v58  ;;  %v3532_v58 = vrot.slane %v2506_v19, 5 }
 0x1fb   : > { %2806 = vmatprep.mubr.bf16.mxu1 %v1539_v20 }
 0x1fc   : > { %v3547_v1 = vsel %vm1840_vm0, %v3532_v58, %v3520_v50 }
 0x202   : > { %2807 = vmatmul.mubr.bf16.gmra.mrb[8].mxu1 %v1540_v63 }
 0x203   : > { %2810 = vmatprep.mubr.bf16.mxu1 %v1541_v0  ;;  %v3542_v0 = vsel %vm1905_vm3, %v3515_v48, %v3518_v49 }
 0x20a   : > { %2811 = vmatmul.mubr.bf16.gmra.mrb[12].mxu1 %v1542_v4 }
 0x2c5   : > { %v2800_v7 = vpop.f32.mrb[0].mxu1 }
 0x2c6   : > { %v1760_v3 = vadd.f32 %v2800_v7, %v3494_v32  ;;  %v1642_v8 = vpop.f32.mrb[1].mxu1 }
 0x2c7   : > { %v1758_v26 = vadd.f32 %v3494_v32, %v1642_v8  ;;  %v2801_v42 = vpop.f32.mrb[2].mxu1 }
 0x2c8   : > { %v1789_v25 = vadd.f32 %v1782_v30, %v1760_v3  ;;  %v1847_v45 = vadd.f32 %v1841_v15, %v1760_v3  ;;  %v1761_v46 = vadd.f32 %v2801_v42, %v3494_v32  ;;  %v1645_v47 = vpop.f32.mrb[3].mxu1 }
 0x2c9   : > { %v1787_v34 = vadd.f32 %v1781_v16, %v1758_v26  ;;  %v1759_v39 = vadd.f32 %v3494_v32, %v1645_v47 }
 0x2ca   : > { %v1792_v51 = vmax.f32 %v1789_v25, 0.0  ;;  %v1850_v52 = vmax.f32 %v1847_v45, 0.0  ;;  %v1848_v53 = vadd.f32 %v1843_v6, %v1761_v46 }
 0x2cb   : > { %v1790_v56 = vmax.f32 %v1787_v34, 0.0  ;;  %v1788_v57 = vadd.f32 %v1783_v10, %v1759_v39 }
 0x2cc   : > { %v2435_v59 = vpack.c.bf16 %v1792_v51, %v1792_v51  ;;  %v2436_v20 = vpack.c.bf16 %v1850_v52, %v1850_v52  ;;  %v1851_v60 = vmax.f32 %v1848_v53, 0.0 }
 0x2cd   : > { %v2433_v61 = vpack.c.bf16 %v1790_v56, %v1790_v56  ;;  %v1791_v62 = vmax.f32 %v1788_v57, 0.0  ;;  %v2804_v63 = vpop.f32.mrb[4].mxu1 }
 0x2ce   : > { %v1826_v2 = vshll.u32 %v2435_v59, 16  ;;  %v1867_v4 = vshrl.u32 %v2436_v20, 16  ;;  %v1870_v5 = vshll.u32 %v2436_v20, 16  ;;  %v2437_v12 = vpack.c.bf16 %v1851_v60, %v1851_v60  ;;  %v1658_v21 = vpop.f32.mrb[5].mxu1 }
 0x2cf   : > { %v1807_v13 = vshrl.u32 %v2433_v61, 16  ;;  %v1810_v14 = vshll.u32 %v2433_v61, 16  ;;  %v2434_v15 = vpack.c.bf16 %v1791_v62, %v1791_v62  ;;  %v1764_v16 = vadd.f32 %v2804_v63, %v3494_v32  ;;  %v2805_v22 = vpop.f32.mrb[6].mxu1 }
 0x2d0   : > { %v1828_v23 = vrot.slane %v1826_v2, 5  ;;  %v1869_v27 = vrot.slane %v1867_v4, 5  ;;  %v1872_v28 = vrot.slane %v1870_v5, 6  ;;  %v1876_v29 = vshrl.u32 %v2437_v12, 16  ;;  %v1661_v30 = vpop.f32.mrb[7].mxu1 }
 0x2d1   : > { %v1809_v31 = vrot.slane %v1807_v13, 4  ;;  %v1812_v9 = vrot.slane %v1810_v14, 5  ;;  %v1879_v33 = vshll.u32 %v2437_v12, 16  ;;  %v1816_v6 = vshll.u32 %v2434_v15, 16 }
 0x2d2   : > { %v1873_v10 = vor.u32 %v1872_v28, %v1869_v27  ;;  %v1878_v36 = vrot.slane %v1876_v29, 5  ;;  %v1820_v37 = vshrl.u32 %v2434_v15, 16  ;;  %v1914_v7 = vadd.f32 %v3499_v35, %v1764_v16 }
 0x2d3   : > { %v1813_v40 = vor.u32 %v1812_v9, %v1809_v31  ;;  %v1881_v3 = vrot.slane %v1879_v33, 6  ;;  %v1818_v8 = vrot.slane %v1816_v6, 5  ;;  %v1977_v26 = vadd.f32 %v3502_v11, %v1764_v16 }
 0x2d4   : > { %v1874_v42 = vrot.slane %v1873_v10, 4  ;;  %v1822_v25 = vrot.slane %v1820_v37, 4  ;;  %v1917_v35 = vmax.f32 %v1914_v7, 0.0  ;;  %v1762_v45 = vadd.f32 %v3494_v32, %v1658_v21 }
 0x2d5   : > { %v1814_v46 = vrot.slane %v1813_v40, 4  ;;  %v3565_v47 = vor.u32 %v1881_v3, %v1878_v36  ;;  %v1980_v34 = vmax.f32 %v1977_v26, 0.0  ;;  %v1765_v39 = vadd.f32 %v2805_v22, %v3494_v32  ;;  %v2808_v51 = vpop.f32.mrb[8].mxu1 }
 0x2d6   : > { %v1823_v11 = vor.u32 %v1822_v25, %v1818_v8  ;;  %v2441_v52 = vpack.c.bf16 %v1917_v35, %v1917_v35  ;;  %v1849_v53 = vadd.f32 %v3487_v17, %v1762_v45  ;;  %v1912_v56 = vadd.f32 %v3504_v38, %v1762_v45  ;;  %v1674_v57 = vpop.f32.mrb[9].mxu1 }
 0x2d7   : > { %v1883_v59 = vsel %vm3553_vm8, %v1874_v42, %v3565_v47  ;;  %v1884_v20 = vrot.slane %v3565_v47, 4  ;;  %v1819_v60 = vsel %vm3560_vm9, %v1814_v46, %v1818_v8  ;;  %v2442_v61 = vpack.c.bf16 %v1980_v34, %v1980_v34  ;;  %v2809_v62 = vpop.f32.mrb[10].mxu1 }
 0x2d8   : > { %2389 = vst [vmem:[%s3578_s5 + $0x8] sm:$0xf] %v1883_v59  ;;  %v1824_v17 = vrot.slane %v1823_v11, 4  ;;  %1832 = vst [vmem:[%s3578_s5] sm:$0xf] %v1819_v60  ;;  %v1951_v38 = vshrl.u32 %v2441_v52, 16  ;;  %v1954_v63 = vshll.u32 %v2441_v52, 16  ;;  %v1978_v21 = vadd.f32 %v3525_v55, %v1765_v39 }
 0x2d9   : > { %v1852_v2 = vmax.f32 %v1849_v53, 0.0  ;;  %v1677_v4 = vpop.f32.mrb[11].mxu1  ;;  %v1997_v5 = vshrl.u32 %v2442_v61, 16  ;;  %v1915_v12 = vmax.f32 %v1912_v56, 0.0  ;;  %v1763_v13 = vadd.f32 %v3494_v32, %v1661_v30 }
 0x2da   : > { %v1829_v14 = vsel %vm3560_vm9, %v1824_v17, %v1828_v23  ;;  %v3586_v15 = vrot.slane %v1951_v38, 6  ;;  %v3588_v16 = vrot.slane %v1954_v63, 7  ;;  %v1981_v29 = vmax.f32 %v1978_v21, 0.0 }
 0x2db   : > { %v2438_v22 = vpack.c.bf16 %v1852_v2, %v1852_v2  ;;  %1833 = vst [vmem:[%s3578_s5 + $0x4] sm:$0xf] %v1829_v14  ;;  %v2403_v27 = vrot.slane %v1997_v5, 11  ;;  %v2439_v28 = vpack.c.bf16 %v1915_v12, %v1915_v12  ;;  %v1913_v31 = vadd.f32 %v3530_v54, %v1763_v13 }
 0x2dc   : > { %v1957_v55 = vor.u32 %v3588_v16, %v3586_v15  ;;  %v1768_v23 = vadd.f32 %v2808_v51, %v3494_v32  ;;  %v2443_v10 = vpack.c.bf16 %v1981_v29, %v1981_v29  ;;  %v1766_v8 = vadd.f32 %v3494_v32, %v1674_v57 }
 0x2dd   : > { %v1886_v30 = vshrl.u32 %v2438_v22, 16  ;;  %v1889_v9 = vshll.u32 %v2438_v22, 16  ;;  %v1932_v33 = vshrl.u32 %v2439_v28, 16  ;;  %v1935_v6 = vshll.u32 %v2439_v28, 16  ;;  %v2812_v37 = vpop.f32.mrb[12].mxu1 }
 0x2de   : > { %v1916_v36 = vmax.f32 %v1913_v31, 0.0  ;;  %v2036_v3 = vadd.f32 %v3537_v18, %v1768_v23  ;;  %v1690_v26 = vpop.f32.mrb[13].mxu1  ;;  %v2002_v25 = vshrl.u32 %v2443_v10, 16  ;;  %v2005_v35 = vshll.u32 %v2443_v10, 16 }
 0x2df   : > { %v1888_v7 = vrot.slane %v1886_v30, 5  ;;  %v1891_v40 = vrot.slane %v1889_v9, 6  ;;  %v1934_v54 = vrot.slane %v1932_v33, 6  ;;  %v1937_v42 = vrot.slane %v1935_v6, 7  ;;  %v3597_v45 = vpop.f32.mrb[14].mxu1 }
 0x2e0   : > { %v2440_v47 = vpack.c.bf16 %v1916_v36, %v1916_v36  ;;  %v2039_v34 = vmax.f32 %v2036_v3, 0.0  ;;  %v1979_v39 = vadd.f32 %v3507_v24, %v1766_v8  ;;  %v3600_v51 = vpop.f32.mrb[15].mxu1  ;;  %v2004_v52 = vrot.slane %v2002_v25, 7 }
 0x2e1   : > { %v1892_v46 = vor.u32 %v1891_v40, %v1888_v7  ;;  %v1938_v11 = vor.u32 %v1937_v42, %v1934_v54  ;;  %v1769_v18 = vadd.f32 %v2809_v62, %v3494_v32  ;;  %v1767_v53 = vadd.f32 %v3494_v32, %v1677_v4 }
 0x2e2   : > { %v1941_v59 = vshrl.u32 %v2440_v47, 16  ;;  %v1944_v60 = vshll.u32 %v2440_v47, 16  ;;  %v2446_v24 = vpack.c.bf16 %v2039_v34, %v2039_v34  ;;  %v2007_v17 = vor.u32 %v2005_v35, %v2004_v52 }
 0x2e3   : > { %v1893_v56 = vsel %vm3553_vm8, %v1884_v20, %v1892_v46  ;;  %v1939_v61 = vrot.slane %v1938_v11, 4  ;;  %v2009_v38 = vrot.slane %v2004_v52, 4  ;;  %v1982_v62 = vmax.f32 %v1979_v39, 0.0 }
 0x2e4   : > { %2390 = vst [vmem:[%s3578_s5 + $0xc] sm:$0xf] %v1893_v56  ;;  %v1943_v63 = vrot.slane %v1941_v59, 6  ;;  %v1946_v2 = vrot.slane %v1944_v60, 7  ;;  %v2061_v4 = vshll.u32 %v2446_v24, 16  ;;  %v2065_v5 = vshrl.u32 %v2446_v24, 16 }
 0x2e5   : > { %v2008_v20 = vsel %vm3608_vm14, %v2403_v27, %v2007_v17  ;;  %v2444_v21 = vpack.c.bf16 %v1982_v62, %v1982_v62  ;;  %v2037_v13 = vadd.f32 %v3512_v44, %v1769_v18  ;;  %v2092_v14 = vadd.f32 %v3532_v58, %v1769_v18 }
 0x2e6   : > { %2404 = vst [vmem:[%s3578_s5 + $0x18] sm:$0xf] %v2008_v20  ;;  %v1947_v22 = vor.u32 %v1946_v2, %v1943_v63  ;;  %v2063_v28 = vrot.slane %v2061_v4, 5  ;;  %v2067_v29 = vrot.slane %v2065_v5, 4  ;;  %v2035_v31 = vadd.f32 %v3510_v43, %v1767_v53 }
 0x2e7   : > { %v2011_v30 = vshrl.u32 %v2444_v21, 16  ;;  %v2014_v27 = vshll.u32 %v2444_v21, 16  ;;  %v2040_v9 = vmax.f32 %v2037_v13, 0.0  ;;  %v2095_v23 = vmax.f32 %v2092_v14, 0.0 }
 0x2e8   : > { %v1948_v33 = vsel %vm3617_vm15, %v1939_v61, %v1947_v22  ;;  %v1949_v6 = vrot.slane %v1947_v22, 4  ;;  %v2068_v10 = vor.u32 %v2067_v29, %v2063_v28  ;;  %v2038_v36 = vmax.f32 %v2035_v31, 0.0 }
 0x2e9   : > { %2396 = vst [vmem:[%s3578_s5 + $0x10] sm:$0xf] %v1948_v33  ;;  %v2013_v44 = vrot.slane %v2011_v30, 7  ;;  %v2447_v58 = vpack.c.bf16 %v2040_v9, %v2040_v9  ;;  %v2448_v7 = vpack.c.bf16 %v2095_v23, %v2095_v23  ;;  %v1772_v40 = vadd.f32 %v2812_v37, %v3494_v32 }
 0x2ea   : > { %v1958_v43 = vsel %vm3617_vm15, %v1949_v6, %v1957_v55  ;;  %v2069_v3 = vrot.slane %v2068_v10, 4  ;;  %v2445_v8 = vpack.c.bf16 %v2038_v36, %v2038_v36  ;;  %v1770_v54 = vadd.f32 %v3494_v32, %v1690_v26 }
 0x2eb   : > { %2397 = vst [vmem:[%s3578_s5 + $0x14] sm:$0xf] %v1958_v43  ;;  %v2016_v42 = vor.u32 %v2014_v27, %v2013_v44  ;;  %v2071_v25 = vshll.u32 %v2447_v58, 16  ;;  %v2109_v35 = vshrl.u32 %v2448_v7, 16  ;;  %v2112_v46 = vshll.u32 %v2448_v7, 16 }
 0x2ec   : > { %v2052_v47 = vshrl.u32 %v2445_v8, 16  ;;  %v2055_v34 = vshll.u32 %v2445_v8, 16  ;;  %v2154_v37 = vadd.f32 %v3542_v0, %v1772_v40  ;;  %v2093_v15 = vadd.f32 %v3547_v1, %v1770_v54 }
 0x2ed   : > { %v2017_v16 = vsel %vm3608_vm14, %v2009_v38, %v2016_v42  ;;  %v2073_v55 = vrot.slane %v2071_v25, 5  ;;  %v2111_v39 = vrot.slane %v2109_v35, 5  ;;  %v2114_v11 = vrot.slane %v2112_v46, 6 }
 0x2ee   : > { %2405 = vst [vmem:[%s3578_s5 + $0x1c] sm:$0xf] %v2017_v16  ;;  %v2054_v26 = vrot.slane %v2052_v47, 4  ;;  %v2057_v52 = vrot.slane %v2055_v34, 5  ;;  %v2157_v18 = vmax.f32 %v2154_v37, 0.0  ;;  %v2096_v53 = vmax.f32 %v2093_v15, 0.0 }
 0x2ef   : > { %v2074_v56 = vsel %vm3560_vm9, %v2069_v3, %v2073_v55  ;;  %v1773_v59 = vadd.f32 %v3597_v45, %v3494_v32  ;;  %v1771_v0 = vadd.f32 %v3494_v32, %v3600_v51  ;;  %v2115_v24 = vor.u32 %v2114_v11, %v2111_v39 }
 0x2f0   : > { %2412 = vst [vmem:[%s3578_s5 + $0x24] sm:$0xf] %v2074_v56  ;;  %v2058_v1 = vor.u32 %v2057_v52, %v2054_v26  ;;  %v2452_v57 = vpack.c.bf16 %v2157_v18, %v2157_v18  ;;  %v2449_v60 = vpack.c.bf16 %v2096_v53, %v2096_v53 }
 0x2f1   : > { %v2155_v61 = vadd.f32 %v3518_v49, %v1773_v59  ;;  %v2094_v17 = vadd.f32 %v3520_v50, %v1771_v0  ;;  %v2153_v38 = vadd.f32 %v3515_v48, %v1771_v0  ;;  %v2116_v29 = vrot.slane %v2115_v24, 4 }
 0x2f2   : > { %v2059_v62 = vrot.slane %v2058_v1, 4  ;;  %v2179_v63 = vshrl.u32 %v2452_v57, 16  ;;  %v2182_v2 = vshll.u32 %v2452_v57, 16  ;;  %v2118_v4 = vshrl.u32 %v2449_v60, 16 }
 0x2f3   : > { %v2121_v45 = vshll.u32 %v2449_v60, 16  ;;  %v2158_v5 = vmax.f32 %v2155_v61, 0.0  ;;  %v2097_v20 = vmax.f32 %v2094_v17, 0.0  ;;  %v2156_v32 = vmax.f32 %v2153_v38, 0.0 }
 0x2f4   : > { %v2064_v51 = vsel %vm3560_vm9, %v2059_v62, %v2063_v28  ;;  %v2181_v21 = vrot.slane %v2179_v63, 6  ;;  %v2184_v13 = vrot.slane %v2182_v2, 7  ;;  %v2120_v14 = vrot.slane %v2118_v4, 5 }
 0x2f5   : > { %2411 = vst [vmem:[%s3578_s5 + $0x20] sm:$0xf] %v2064_v51  ;;  %v2123_v49 = vrot.slane %v2121_v45, 6  ;;  %v2453_v22 = vpack.c.bf16 %v2158_v5, %v2158_v5  ;;  %v2450_v50 = vpack.c.bf16 %v2097_v20, %v2097_v20  ;;  %v2451_v48 = vpack.c.bf16 %v2156_v32, %v2156_v32 }
 0x2f6   : > { %v2185_v31 = vor.u32 %v2184_v13, %v2181_v21 }
 0x2f7   : > { %v2124_v30 = vor.u32 %v2123_v49, %v2120_v14  ;;  %v2189_v27 = vshrl.u32 %v2453_v22, 16  ;;  %v2192_v9 = vshll.u32 %v2453_v22, 16  ;;  %v2128_v23 = vshrl.u32 %v2450_v50, 16 }
 0x2f8   : > { %v2187_v33 = vrot.slane %v2185_v31, 4  ;;  %v2131_v19 = vshll.u32 %v2450_v50, 16  ;;  %v2170_v28 = vshrl.u32 %v2451_v48, 16  ;;  %v2173_v6 = vshll.u32 %v2451_v48, 16 }
 0x2f9   : > { %v2125_v10 = vsel %vm3553_vm8, %v2116_v29, %v2124_v30  ;;  %v2126_v36 = vrot.slane %v2124_v30, 4  ;;  %v2191_v44 = vrot.slane %v2189_v27, 6  ;;  %v2194_v58 = vrot.slane %v2192_v9, 7 }
 0x2fa   : > { %2418 = vst [vmem:[%s3578_s5 + $0x28] sm:$0xf] %v2125_v10  ;;  %v2130_v7 = vrot.slane %v2128_v23, 5  ;;  %v2133_v40 = vrot.slane %v2131_v19, 6  ;;  %v2172_v43 = vrot.slane %v2170_v28, 6  ;;  %v2175_v3 = vrot.slane %v2173_v6, 7 }
 0x2fb   : > { %v2195_v8 = vor.u32 %v2194_v58, %v2191_v44 }
 0x2fc   : > { %v2134_v54 = vor.u32 %v2133_v40, %v2130_v7  ;;  %v2176_v42 = vor.u32 %v2175_v3, %v2172_v43 }
 0x2fd   : > { %v2196_v25 = vsel %vm3617_vm15, %v2187_v33, %v2195_v8 }
 0x2fe   : > { %2426 = vst [vmem:[%s3578_s5 + $0x34] sm:$0xf] %v2196_v25  ;;  %v2135_v35 = vsel %vm3553_vm8, %v2126_v36, %v2134_v54  ;;  %v2177_v46 = vrot.slane %v2176_v42, 4 }
 0x2ff   : > { %2419 = vst [vmem:[%s3578_s5 + $0x2c] sm:$0xf] %v2135_v35 }
 0x300   : > { %v2186_v47 = vsel %vm3617_vm15, %v2177_v46, %v2185_v31 }
 0x301   : > { %2425 = vst [vmem:[%s3578_s5 + $0x30] sm:$0xf] %v2186_v47 }
 0x302   : > { %3100 = shalt.err (!%p3097_p7)
}
 0x303   : > { %s3101_s28 = scalar_lea.hbm %s3667_s20, 896  ;;  %s3105_s23 = scalar_lea.hbm %s3720_s4, 3584 }
 0x304   : > { %p3102_p9 = scmp.ne.s32.totalorder %s3667_s20, %s3101_s28  ;;  %p3106_p5 = scmp.lt.u32.totalorder %s3667_s20, %s3720_s4 }
 0x305   : > { %p3107_p10 = scmp.lt.u32.totalorder %s3105_s23, %s3101_s28  ;;  %p3109_p2 = scmp.lt.u32.totalorder %s3101_s28, %s3667_s20 }
 0x306   : > { %p3103_p12 = pnand %p3102_p9, %p3311_p6 }
 0x307   : > { %p3108_p1 = por %p3107_p10, %p3106_p5 }
 0x308   : > { %p3104_p0 = pneg %p3103_p12 }
 0x309   : > { %p3110_p4 = por %p3109_p2, %p3108_p1 }
 0x30b   : > { %p3111_p8 = pnand %p3110_p4, %p3104_p0 }
 0x30d   : > { %3114 = shalt.err (!%p3111_p8)
}
 0x30e   : > { %s3166_s5 = smov 64   ;;  %s3167_s25 = smov 4  }
 0x30f   : > { %2890 = dma.vmem_to_hbm [thread:$0]  (%p3311_p6), %s3669_s7, 896, %s3667_s20, %s2203_s19, %s3166_s5, %s3166_s5, %s3167_s25  }
 0x310 PF: > { %p2912_p11 = scmp.ge.s32.totalorder %s3157_s18, 2  ;;  %s2232_s29 = sand.u32 1, %s3145_s15  }
 0x311   : > { %p3743_p13 = scmp.ne.s32.totalorder %s3725_s22, 0  ;;  %s2233_s30 = scalar_lea.sflag [#allocation7], %s2232_s29 }
 0x313   : > { %p2904_p3 = pnand %p2912_p11, %p3743_p13 }
 0x315   : > { %3140 = dma.done.wait (!%p2904_p3), %s2233_s30, 896  }
 0x316   : > { %3142 = vsyncadd (!%p2904_p3), %s2233_s30, 4294966400  ;;  %p18_p7 = scmp.ge.s32.totalorder %s3301_s26, 6   ;;  %s3744_s15 = smov %s3149_s16 }
 0x317   : > { %s3745_s16 = smov %s3153_s17  ;;  %s3746_s17 = smov %s3317_s14 }
 0x318   : > { %s3747_s18 = smov %s3301_s26  ;;  %20 = sbr.rel (!%p18_p7) target bundleno = 6 (0x6), region = 105 }
 0x31f   :  { %2238 = vsyncpa [#allocation6], 1 }
 0x320   :  { %2240 = vsyncpa [#allocation6 + $0x1], 1 }
 0x321   :  { %2241 = vsyncpa [#allocation9], 1 }
 0x322   :  { %2242 = vsyncpa [#allocation7], 1 }
 0x323   :  { %2244 = vsyncpa [#allocation7 + $0x1], 1 }

</bundles_post_ra>
